<compile_context>
chip_gen: v7x
topology: tpu7x:2x2x1
jax: 0.10.0
libtpu: 0.0.40
codegen_flags: <defaults>
</compile_context>

<pallas_src>
import numpy as np

import jax
import jax.numpy as jnp
from jax.experimental import pallas as pl
from jax.experimental.pallas import tpu as pltpu


def _round_up(v, m):
    return (v + m - 1) // m * m


def _sbig_layout(n):
    """Row offsets of the blocks packed into the small-constant slab S.

    S rows:  [0, 14n)           R1e  pool1 even-row selector, cols [0, 32n)
             [r2_off, +5n)      R2e  pool2 even-row selector, cols [0, 14n-5)
             [wf2_off, +128)    fc2 weight^T (zero-padded 120->128 rows), cols [0, 84)
             [wf3_off, +84)     fc3 weight^T, cols [0, 10)
    All offsets are multiples of 16 so bf16 sublane-packed reads stay aligned.
    """
    r2_off = _round_up(14 * n, 16)
    wf2_off = _round_up(r2_off + 5 * n, 16)
    wf3_off = _round_up(wf2_off + 128, 16)
    rows = _round_up(wf3_off + 84, 16)
    width = _round_up(max(32 * n, 14 * n - 5, 84), 128)
    return r2_off, wf2_off, wf3_off, rows, width


# ------------------------------- fused kernel ------------------------------ #

def _lenet_kernel(x_ref, w_ref, s_ref, b_ref, o_ref):
    f32, bf16 = jnp.float32, jnp.bfloat16
    n = o_ref.shape[0]
    m1 = n * 32                      # conv1 output rows (incl. garbage rows h >= 28)
    m2 = n * 14 - 4                  # conv2 output rows (incl. garbage rows oh >= 10)
    r2_off, wf2_off, wf3_off, _, _ = _sbig_layout(n)

    # ---- conv1: K-concat of the 5 row-shifted input slabs -> ONE bf16 matmul ----
    # (+1 extra output row so the pool row pair-max is a plain shifted slice)
    lhs = jnp.concatenate([x_ref[kh:kh + m1 + 1, :] for kh in range(5)], axis=1)
    y = jnp.dot(lhs, w_ref[:, 0:256], preferred_element_type=f32)
    y = jnp.maximum(y + b_ref[0:1, :], 0.0)                       # (m1+1, 256)
    # pool1: even/odd output columns live in separate 128-lane halves -> free VPU max;
    # row pairs via the one-row-shifted slab; one 0/1 selector matmul picks even rows
    # (and drops the cross-image garbage rows h >= 28).
    y = jnp.maximum(y[:, :128], y[:, 128:])                       # (m1+1, 128)
    y = jnp.maximum(y[:m1], y[1:m1 + 1]).astype(bf16)             # (m1,   128)
    a2 = jnp.dot(s_ref[0:14 * n, 0:m1], y,
                 preferred_element_type=f32)                      # (14n, 128) rows b*14+h1

    # ---- conv2: same structure ----
    lhs = jnp.concatenate([a2[kh:kh + m2, :] for kh in range(5)],
                          axis=1).astype(bf16)
    y = jnp.dot(lhs, w_ref[:, 256:512], preferred_element_type=f32)
    y = jnp.maximum(y + b_ref[1:2, :], 0.0)                       # (m2, 256)
    y = jnp.maximum(y[:, :128], y[:, 128:])                       # (m2, 128)
    y = jnp.maximum(y[:m2 - 1], y[1:m2]).astype(bf16)             # (m2-1, 128)
    a4 = jnp.dot(s_ref[r2_off:r2_off + 5 * n, 0:m2 - 1], y,
                 preferred_element_type=f32)                      # (5n, 128) rows ph*n+b

    # ---- fc1: PyTorch NCHW flatten folded into the packed weight; the 5 pooled-height
    # row blocks are concatenated along lanes -> ONE matmul ----
    lhs = jnp.concatenate([a4[ph * n:(ph + 1) * n, :] for ph in range(5)],
                          axis=1).astype(bf16)                    # (n, 640)
    z = jnp.dot(lhs, w_ref[:, 512:640], preferred_element_type=f32)
    z = jnp.maximum(z + b_ref[2:3, 0:128], 0.0).astype(bf16)      # (n, 128)

    # ---- fc2 + ReLU, fc3 ----
    z = jnp.dot(z, s_ref[wf2_off:wf2_off + 128, 0:84], preferred_element_type=f32)
    z = jnp.maximum(z + b_ref[3:4, 0:84], 0.0).astype(bf16)
    z = jnp.dot(z, s_ref[wf3_off:wf3_off + 84, 0:10], preferred_element_type=f32)
    o_ref[...] = (z + b_ref[4:5, 0:10]).astype(o_ref.dtype)


def net_forward(x_nchw, packed):
    """x_nchw: (N, 3, 32, 32) float32 -> logits (N, 10). One fused Pallas kernel."""
    n, c, h, w = x_nchw.shape
    s_rows, s_cols = _sbig_layout(n)[3:5]
    if packed["S"].shape != (s_rows, s_cols):
        raise ValueError("pack_params(batch=...) was built for a different batch size")

    # One tiny per-call layout transform on the ~24 KiB input:
    # rows = b*32 + h, cols = w*3 + c, zero-padded to 128 lanes (lane-aligned kh concat)
    # and +8 zero rows (room for the kh row shifts and the pool row shift).
    x2d = jnp.transpose(x_nchw, (0, 2, 3, 1)).reshape(n * h, w * c)
    x2d = jnp.pad(x2d, ((0, 8), (0, 128 - w * c))).astype(jnp.bfloat16)

    vmem = pl.BlockSpec(memory_space=pltpu.MemorySpace.VMEM)
    return pl.pallas_call(
        _lenet_kernel,
        out_shape=jax.ShapeDtypeStruct((n, 10), jnp.float32),
        in_specs=[vmem, vmem, vmem, vmem],
        out_specs=vmem,
    )(x2d, packed["W"], packed["S"], packed["B"])


# -------------------- one-time weight packing (host side) ------------------ #

def pack_params(params, batch):
    """Fold im2col, the pooling gathers, the NCHW flatten and all transposes into
    packed constant matrices, once, at init time (numpy, host side)."""
    n = batch
    w1 = np.asarray(params["conv1_w"], np.float32)   # (6, 3, 5, 5)
    b1 = np.asarray(params["conv1_b"], np.float32)
    w2 = np.asarray(params["conv2_w"], np.float32)   # (16, 6, 5, 5)
    b2 = np.asarray(params["conv2_b"], np.float32)
    f1w = np.asarray(params["fc1_w"], np.float32)    # (120, 400)
    f1b = np.asarray(params["fc1_b"], np.float32)
    f2w = np.asarray(params["fc2_w"], np.float32)    # (84, 120)
    f2b = np.asarray(params["fc2_b"], np.float32)
    f3w = np.asarray(params["fc3_w"], np.float32)    # (10, 84)
    f3b = np.asarray(params["fc3_b"], np.float32)

    # conv1 banded weight: row = kh*128 + (wi*3 + ci); col = (ow%2)*128 + c1*14 + ow//2
    # (even/odd output columns go to separate 128-lane halves so pooling is a VPU max).
    W1 = np.zeros((5 * 128, 256), np.float32)
    for kh in range(5):
        for kw in range(5):
            for ow in range(28):
                wi, col0 = ow + kw, (ow % 2) * 128 + ow // 2
                for ci in range(3):
                    W1[kh * 128 + wi * 3 + ci, col0 + np.arange(6) * 14] = w1[:, ci, kh, kw]
    B1 = np.zeros((256,), np.float32)
    for ow in range(28):
        B1[(ow % 2) * 128 + np.arange(6) * 14 + ow // 2] = b1

    # conv2 banded weight: row = kh*128 + (c1*14 + wi); col = (ow%2)*128 + c2*5 + ow//2
    W2 = np.zeros((5 * 128, 256), np.float32)
    for kh in range(5):
        for kw in range(5):
            for ow in range(10):
                wi, col0 = ow + kw, (ow % 2) * 128 + ow // 2
                for ci in range(6):
                    W2[kh * 128 + ci * 14 + wi, col0 + np.arange(16) * 5] = w2[:, ci, kh, kw]
    B2 = np.zeros((256,), np.float32)
    for ow in range(10):
        B2[(ow % 2) * 128 + np.arange(16) * 5 + ow // 2] = b2

    # fc1: PyTorch flatten order f = c2*25 + ph*5 + pw, split per pooled height ph:
    # WF1[ph*128 + c2*5 + pw, j] = fc1_w[j, c2*25 + ph*5 + pw]
    WF1 = np.zeros((5 * 128, 128), np.float32)
    f1r = f1w.reshape(120, 16, 5, 5)                               # (j, c2, ph, pw)
    for ph in range(5):
        WF1[ph * 128:ph * 128 + 80, :120] = f1r[:, :, ph, :].transpose(1, 2, 0).reshape(80, 120)

    WBIG = np.concatenate([W1, W2, WF1], axis=1)                   # (640, 640)

    # Small-constant slab: even-row pool selectors + fc2/fc3 weights.
    r2_off, wf2_off, wf3_off, rows, width = _sbig_layout(n)
    S = np.zeros((rows, width), np.float32)
    for b in range(n):
        for p in range(14):
            S[b * 14 + p, b * 32 + 2 * p] = 1.0                    # R1e (rows b*14+p)
        for p in range(5):
            S[r2_off + p * n + b, b * 14 + 2 * p] = 1.0            # R2e (rows p*n+b)
    S[wf2_off:wf2_off + 120, 0:84] = f2w.T
    S[wf3_off:wf3_off + 84, 0:10] = f3w.T

    # Biases stay f32 (added after the f32 accumulation).
    B = np.zeros((8, 256), np.float32)
    B[0], B[1] = B1, B2
    B[2, :120], B[3, :84], B[4, :10] = f1b, f2b, f3b

    return {"W": jnp.asarray(WBIG, jnp.bfloat16),
            "S": jnp.asarray(S, jnp.bfloat16),
            "B": jnp.asarray(B, jnp.float32)}


# ------------------------- reference + param init -------------------------- #

def init_params(key):
    ks = jax.random.split(key, 10)
    s = 0.1
    return {
        "conv1_w": s * jax.random.normal(ks[0], (6, 3, 5, 5), jnp.float32),
        "conv1_b": s * jax.random.normal(ks[1], (6,), jnp.float32),
        "conv2_w": s * jax.random.normal(ks[2], (16, 6, 5, 5), jnp.float32),
        "conv2_b": s * jax.random.normal(ks[3], (16,), jnp.float32),
        "fc1_w": s * jax.random.normal(ks[4], (120, 400), jnp.float32),
        "fc1_b": s * jax.random.normal(ks[5], (120,), jnp.float32),
        "fc2_w": s * jax.random.normal(ks[6], (84, 120), jnp.float32),
        "fc2_b": s * jax.random.normal(ks[7], (84,), jnp.float32),
        "fc3_w": s * jax.random.normal(ks[8], (10, 84), jnp.float32),
        "fc3_b": s * jax.random.normal(ks[9], (10,), jnp.float32),
    }


def net_reference(x, p):
    """Pure-JAX f32 reference with PyTorch semantics (for a runtime self-check)."""
    hi = jax.lax.Precision.HIGHEST
    y = jax.lax.conv_general_dilated(x, p["conv1_w"], (1, 1), "VALID",
                                     dimension_numbers=("NCHW", "OIHW", "NCHW"),
                                     precision=hi)
    y = jnp.maximum(y + p["conv1_b"][None, :, None, None], 0.0)
    y = y.reshape(y.shape[0], y.shape[1], 14, 2, 14, 2).max(axis=(3, 5))
    y = jax.lax.conv_general_dilated(y, p["conv2_w"], (1, 1), "VALID",
                                     dimension_numbers=("NCHW", "OIHW", "NCHW"),
                                     precision=hi)
    y = jnp.maximum(y + p["conv2_b"][None, :, None, None], 0.0)
    y = y.reshape(y.shape[0], y.shape[1], 5, 2, 5, 2).max(axis=(3, 5))
    y = y.reshape(y.shape[0], -1)
    y = jnp.maximum(jnp.dot(y, p["fc1_w"].T, precision=hi) + p["fc1_b"], 0.0)
    y = jnp.maximum(jnp.dot(y, p["fc2_w"].T, precision=hi) + p["fc2_b"], 0.0)
    return jnp.dot(y, p["fc3_w"].T, precision=hi) + p["fc3_b"]


if __name__ == "__main__":
    key = jax.random.PRNGKey(0)
    kx, kp = jax.random.split(key)
    # Net's forward implies 3-channel 32x32 inputs (CIFAR-style); batch = 2.
    x = jax.random.normal(kx, (2, 3, 32, 32), jnp.float32)
    params = init_params(kp)
    packed = pack_params(params, batch=x.shape[0])

    out = jax.block_until_ready(jax.jit(net_forward)(x, packed))
    assert out.shape == (2, 10) and out.dtype == jnp.float32

    ref = net_reference(x, params)
    err = float(jnp.max(jnp.abs(out - ref)))
    # Tolerance re-derived for bf16 MXU operands (pool selection is exact; conv/fc
    # operand rounding compounds to a few 1e-2 at these magnitudes).
    assert err < 2.5e-1, f"kernel/reference mismatch: max abs err = {err}"
    print("KERNEL_OK")
</pallas_src>

<mosaic_0001>
module attributes {stable_mosaic.version = 11 : i64} {
  func.func @_lenet_kernel(%arg0: memref<72x128xbf16, #tpu.memory_space<vmem>>, %arg1: memref<640x640xbf16, #tpu.memory_space<vmem>>, %arg2: memref<272x128xbf16, #tpu.memory_space<vmem>>, %arg3: memref<8x256xf32, #tpu.memory_space<vmem>>, %arg4: memref<2x10xf32, #tpu.memory_space<vmem>>) attributes {dimension_semantics = [], scalar_prefetch = 0 : i64, scratch_operands = 0 : i64, tpu.core_type = #tpu.core_type<tc>} {
    %c0 = arith.constant 0 : index
    %c0_0 = arith.constant 0 : index
    %0 = vector.load %arg0[%c0, %c0_0] : memref<72x128xbf16, #tpu.memory_space<vmem>>, vector<65x128xbf16>
    %c1 = arith.constant 1 : index
    %c0_1 = arith.constant 0 : index
    %1 = vector.load %arg0[%c1, %c0_1] : memref<72x128xbf16, #tpu.memory_space<vmem>>, vector<65x128xbf16>
    %c2 = arith.constant 2 : index
    %c0_2 = arith.constant 0 : index
    %2 = vector.load %arg0[%c2, %c0_2] : memref<72x128xbf16, #tpu.memory_space<vmem>>, vector<65x128xbf16>
    %c3 = arith.constant 3 : index
    %c0_3 = arith.constant 0 : index
    %3 = vector.load %arg0[%c3, %c0_3] : memref<72x128xbf16, #tpu.memory_space<vmem>>, vector<65x128xbf16>
    %c4 = arith.constant 4 : index
    %c0_4 = arith.constant 0 : index
    %4 = vector.load %arg0[%c4, %c0_4] : memref<72x128xbf16, #tpu.memory_space<vmem>>, vector<65x128xbf16>
    %5 = tpu.concatenate %0, %1, %2, %3, %4 in 1 : vector<65x128xbf16>, vector<65x128xbf16>, vector<65x128xbf16>, vector<65x128xbf16>, vector<65x128xbf16> -> vector<65x640xbf16>
    %c0_5 = arith.constant 0 : index
    %c0_6 = arith.constant 0 : index
    %6 = vector.load %arg1[%c0_5, %c0_6] : memref<640x640xbf16, #tpu.memory_space<vmem>>, vector<640x256xbf16>
    %cst = arith.constant dense<0.000000e+00> : vector<65x256xf32>
    %7 = tpu.matmul %5, %6, %cst {dimension_numbers = #tpu.dot_dimension_numbers<[1], [0], [0], [1], [0, 0, 1, 1], [], []>} : vector<65x640xbf16>, vector<640x256xbf16>, vector<65x256xf32> -> vector<65x256xf32>
    %c0_7 = arith.constant 0 : index
    %c0_8 = arith.constant 0 : index
    %8 = vector.load %arg3[%c0_7, %c0_8] : memref<8x256xf32, #tpu.memory_space<vmem>>, vector<1x256xf32>
    %9 = vector.broadcast %8 : vector<1x256xf32> to vector<65x256xf32>
    %10 = arith.addf %7, %9 : vector<65x256xf32>
    %cst_9 = arith.constant 0.000000e+00 : f32
    %11 = vector.broadcast %cst_9 : f32 to vector<65x256xf32>
    %12 = arith.maximumf %10, %11 : vector<65x256xf32>
    %13 = vector.extract_strided_slice %12 {offsets = [0, 0], sizes = [65, 128], strides = [1, 1]} : vector<65x256xf32> to vector<65x128xf32>
    %14 = vector.extract_strided_slice %12 {offsets = [0, 128], sizes = [65, 128], strides = [1, 1]} : vector<65x256xf32> to vector<65x128xf32>
    %15 = arith.maximumf %13, %14 : vector<65x128xf32>
    %16 = vector.extract_strided_slice %15 {offsets = [0, 0], sizes = [64, 128], strides = [1, 1]} : vector<65x128xf32> to vector<64x128xf32>
    %17 = vector.extract_strided_slice %15 {offsets = [1, 0], sizes = [64, 128], strides = [1, 1]} : vector<65x128xf32> to vector<64x128xf32>
    %18 = arith.maximumf %16, %17 : vector<64x128xf32>
    %19 = arith.truncf %18 : vector<64x128xf32> to vector<64x128xbf16>
    %c0_10 = arith.constant 0 : index
    %c0_11 = arith.constant 0 : index
    %20 = vector.load %arg2[%c0_10, %c0_11] : memref<272x128xbf16, #tpu.memory_space<vmem>>, vector<28x64xbf16>
    %cst_12 = arith.constant dense<0.000000e+00> : vector<28x128xf32>
    %21 = tpu.matmul %20, %19, %cst_12 {dimension_numbers = #tpu.dot_dimension_numbers<[1], [0], [0], [1], [0, 0, 1, 1], [], []>} : vector<28x64xbf16>, vector<64x128xbf16>, vector<28x128xf32> -> vector<28x128xf32>
    %22 = vector.extract_strided_slice %21 {offsets = [0, 0], sizes = [24, 128], strides = [1, 1]} : vector<28x128xf32> to vector<24x128xf32>
    %23 = vector.extract_strided_slice %21 {offsets = [1, 0], sizes = [24, 128], strides = [1, 1]} : vector<28x128xf32> to vector<24x128xf32>
    %24 = vector.extract_strided_slice %21 {offsets = [2, 0], sizes = [24, 128], strides = [1, 1]} : vector<28x128xf32> to vector<24x128xf32>
    %25 = vector.extract_strided_slice %21 {offsets = [3, 0], sizes = [24, 128], strides = [1, 1]} : vector<28x128xf32> to vector<24x128xf32>
    %26 = vector.extract_strided_slice %21 {offsets = [4, 0], sizes = [24, 128], strides = [1, 1]} : vector<28x128xf32> to vector<24x128xf32>
    %27 = tpu.concatenate %22, %23, %24, %25, %26 in 1 : vector<24x128xf32>, vector<24x128xf32>, vector<24x128xf32>, vector<24x128xf32>, vector<24x128xf32> -> vector<24x640xf32>
    %28 = arith.truncf %27 : vector<24x640xf32> to vector<24x640xbf16>
    %c0_13 = arith.constant 0 : index
    %c256 = arith.constant 256 : index
    %29 = vector.load %arg1[%c0_13, %c256] : memref<640x640xbf16, #tpu.memory_space<vmem>>, vector<640x256xbf16>
    %cst_14 = arith.constant dense<0.000000e+00> : vector<24x256xf32>
    %30 = tpu.matmul %28, %29, %cst_14 {dimension_numbers = #tpu.dot_dimension_numbers<[1], [0], [0], [1], [0, 0, 1, 1], [], []>} : vector<24x640xbf16>, vector<640x256xbf16>, vector<24x256xf32> -> vector<24x256xf32>
    %c1_15 = arith.constant 1 : index
    %c0_16 = arith.constant 0 : index
    %31 = vector.load %arg3[%c1_15, %c0_16] : memref<8x256xf32, #tpu.memory_space<vmem>>, vector<1x256xf32>
    %32 = vector.broadcast %31 : vector<1x256xf32> to vector<24x256xf32>
    %33 = arith.addf %30, %32 : vector<24x256xf32>
    %cst_17 = arith.constant 0.000000e+00 : f32
    %34 = vector.broadcast %cst_17 : f32 to vector<24x256xf32>
    %35 = arith.maximumf %33, %34 : vector<24x256xf32>
    %36 = vector.extract_strided_slice %35 {offsets = [0, 0], sizes = [24, 128], strides = [1, 1]} : vector<24x256xf32> to vector<24x128xf32>
    %37 = vector.extract_strided_slice %35 {offsets = [0, 128], sizes = [24, 128], strides = [1, 1]} : vector<24x256xf32> to vector<24x128xf32>
    %38 = arith.maximumf %36, %37 : vector<24x128xf32>
    %39 = vector.extract_strided_slice %38 {offsets = [0, 0], sizes = [23, 128], strides = [1, 1]} : vector<24x128xf32> to vector<23x128xf32>
    %40 = vector.extract_strided_slice %38 {offsets = [1, 0], sizes = [23, 128], strides = [1, 1]} : vector<24x128xf32> to vector<23x128xf32>
    %41 = arith.maximumf %39, %40 : vector<23x128xf32>
    %42 = arith.truncf %41 : vector<23x128xf32> to vector<23x128xbf16>
    %c32 = arith.constant 32 : index
    %c0_18 = arith.constant 0 : index
    %43 = vector.load %arg2[%c32, %c0_18] : memref<272x128xbf16, #tpu.memory_space<vmem>>, vector<10x23xbf16>
    %cst_19 = arith.constant dense<0.000000e+00> : vector<10x128xf32>
    %44 = tpu.matmul %43, %42, %cst_19 {dimension_numbers = #tpu.dot_dimension_numbers<[1], [0], [0], [1], [0, 0, 1, 1], [], []>} : vector<10x23xbf16>, vector<23x128xbf16>, vector<10x128xf32> -> vector<10x128xf32>
    %45 = vector.extract_strided_slice %44 {offsets = [0, 0], sizes = [2, 128], strides = [1, 1]} : vector<10x128xf32> to vector<2x128xf32>
    %46 = vector.extract_strided_slice %44 {offsets = [2, 0], sizes = [2, 128], strides = [1, 1]} : vector<10x128xf32> to vector<2x128xf32>
    %47 = vector.extract_strided_slice %44 {offsets = [4, 0], sizes = [2, 128], strides = [1, 1]} : vector<10x128xf32> to vector<2x128xf32>
    %48 = vector.extract_strided_slice %44 {offsets = [6, 0], sizes = [2, 128], strides = [1, 1]} : vector<10x128xf32> to vector<2x128xf32>
    %49 = vector.extract_strided_slice %44 {offsets = [8, 0], sizes = [2, 128], strides = [1, 1]} : vector<10x128xf32> to vector<2x128xf32>
    %50 = tpu.concatenate %45, %46, %47, %48, %49 in 1 : vector<2x128xf32>, vector<2x128xf32>, vector<2x128xf32>, vector<2x128xf32>, vector<2x128xf32> -> vector<2x640xf32>
    %51 = arith.truncf %50 : vector<2x640xf32> to vector<2x640xbf16>
    %c0_20 = arith.constant 0 : index
    %c512 = arith.constant 512 : index
    %52 = vector.load %arg1[%c0_20, %c512] : memref<640x640xbf16, #tpu.memory_space<vmem>>, vector<640x128xbf16>
    %cst_21 = arith.constant dense<0.000000e+00> : vector<2x128xf32>
    %53 = tpu.matmul %51, %52, %cst_21 {dimension_numbers = #tpu.dot_dimension_numbers<[1], [0], [0], [1], [0, 0, 1, 1], [], []>} : vector<2x640xbf16>, vector<640x128xbf16>, vector<2x128xf32> -> vector<2x128xf32>
    %c2_22 = arith.constant 2 : index
    %c0_23 = arith.constant 0 : index
    %54 = vector.load %arg3[%c2_22, %c0_23] : memref<8x256xf32, #tpu.memory_space<vmem>>, vector<1x128xf32>
    %55 = vector.broadcast %54 : vector<1x128xf32> to vector<2x128xf32>
    %56 = arith.addf %53, %55 : vector<2x128xf32>
    %cst_24 = arith.constant 0.000000e+00 : f32
    %57 = vector.broadcast %cst_24 : f32 to vector<2x128xf32>
    %58 = arith.maximumf %56, %57 : vector<2x128xf32>
    %59 = arith.truncf %58 : vector<2x128xf32> to vector<2x128xbf16>
    %c48 = arith.constant 48 : index
    %c0_25 = arith.constant 0 : index
    %60 = vector.load %arg2[%c48, %c0_25] : memref<272x128xbf16, #tpu.memory_space<vmem>>, vector<128x84xbf16>
    %cst_26 = arith.constant dense<0.000000e+00> : vector<2x84xf32>
    %61 = tpu.matmul %59, %60, %cst_26 {dimension_numbers = #tpu.dot_dimension_numbers<[1], [0], [0], [1], [0, 0, 1, 1], [], []>} : vector<2x128xbf16>, vector<128x84xbf16>, vector<2x84xf32> -> vector<2x84xf32>
    %c3_27 = arith.constant 3 : index
    %c0_28 = arith.constant 0 : index
    %62 = vector.load %arg3[%c3_27, %c0_28] : memref<8x256xf32, #tpu.memory_space<vmem>>, vector<1x84xf32>
    %63 = vector.broadcast %62 : vector<1x84xf32> to vector<2x84xf32>
    %64 = arith.addf %61, %63 : vector<2x84xf32>
    %cst_29 = arith.constant 0.000000e+00 : f32
    %65 = vector.broadcast %cst_29 : f32 to vector<2x84xf32>
    %66 = arith.maximumf %64, %65 : vector<2x84xf32>
    %67 = arith.truncf %66 : vector<2x84xf32> to vector<2x84xbf16>
    %c176 = arith.constant 176 : index
    %c0_30 = arith.constant 0 : index
    %68 = vector.load %arg2[%c176, %c0_30] : memref<272x128xbf16, #tpu.memory_space<vmem>>, vector<84x10xbf16>
    %cst_31 = arith.constant dense<0.000000e+00> : vector<2x10xf32>
    %69 = tpu.matmul %67, %68, %cst_31 {dimension_numbers = #tpu.dot_dimension_numbers<[1], [0], [0], [1], [0, 0, 1, 1], [], []>} : vector<2x84xbf16>, vector<84x10xbf16>, vector<2x10xf32> -> vector<2x10xf32>
    %c4_32 = arith.constant 4 : index
    %c0_33 = arith.constant 0 : index
    %70 = vector.load %arg3[%c4_32, %c0_33] : memref<8x256xf32, #tpu.memory_space<vmem>>, vector<1x10xf32>
    %71 = vector.broadcast %70 : vector<1x10xf32> to vector<2x10xf32>
    %72 = arith.addf %69, %71 : vector<2x10xf32>
    %c0_34 = arith.constant 0 : index
    %c0_35 = arith.constant 0 : index
    %73 = vector.load %arg4[%c0_34, %c0_35] : memref<2x10xf32, #tpu.memory_space<vmem>>, vector<2x10xf32>
    tpu.vector_store %arg4[%c0_34, %c0_35], %72 {strides = array<i32>} : memref<2x10xf32, #tpu.memory_space<vmem>>, vector<2x10xf32>,
    return
  }
}

</mosaic_0001>

<bundles_post_ra>
// kernel: net_forward.1
= control target key start
LH: loop header
LB: loop body
LE: loop exit
PB: predicated region body
PF: predicated region fallthrough
CT: control target
= control target key end

     0   :  { %9 = vsyncpa [#allocation3], 0  ;;  %s3732_s0 = inlined_call_operand.vmem [shape: bf16[72,128], index: 0, kind: input, shape index: {}]   ;;  %s3733_s1 = inlined_call_operand.hbm [shape: bf16[640,640], index: 1, kind: input, shape index: {}]   ;;  %s3734_s2 = inlined_call_operand.vmem [shape: bf16[272,128], index: 2, kind: input, shape index: {}]   ;;  %s3735_s3 = inlined_call_operand.vmem [shape: f32[8,256], index: 3, kind: input, shape index: {}]   ;;  %s3736_s4 = inlined_call_operand.hbm [shape: f32[2,10], index: 4, kind: output, shape index: {}]  }
   0x1   :  { %10 = vsyncpa [#allocation4], 0  ;;  %s3359_s15 = smov [#allocation2]   ;;  %s3311_s19 = scalar_lea.hbm %s3733_s1, 25600 }
   0x2   :  { %s18_s16 = sshll.u32 %s3359_s15, 4  ;;  %p3312_p0 = scmp.ne.s32.totalorder %s3733_s1, %s3311_s19  ;;  %s19_s16 = int_to_ptr.vmem [resolvable:$true] %s18_s16 }
   0x3   :  { %p3315_p1 = scmp.lt.u32.totalorder %s3311_s19, %s3733_s1 }
   0x5   :  { %p3317_p2 = pnand %p3315_p1, %p3312_p0 }
   0x7   :  { %3320 = shalt.err (!%p3317_p2)
}
   0x8   :  { %s3321_s24 = scalar_lea.vmem %s19_s16, 25600  ;;  %p3326_p4 = scmp.lt.s32.totalorder %s19_s16, %s19_s16 }
   0x9   :  { %p3322_p3 = scmp.ne.s32.totalorder %s19_s16, %s3321_s24  ;;  %p3327_p5 = scmp.lt.s32.totalorder %s3321_s24, %s3321_s24 }
   0xb   :  { %p3328_p6 = por %p3327_p5, %p3326_p4 }
   0xd   :  { %p3329_p7 = pnand %p3328_p6, %p3322_p3 }
   0xf   :  { %3332 = shalt.err (!%p3329_p7)
}
  0x10   :  { %s3360_s25 = smov 320   ;;  %s3361_s26 = smov 20  }
  0x11   :  { %24 = dma.hbm_to_vmem [thread:$0]  %s3733_s1, 25600, %s19_s16, [#allocation3], %s3360_s25, %s3360_s25, %s3361_s26  }
  0x12   :  { %3355 = dma.done.wait [#allocation3], 25600  }
  0x13   :  { %3356 = vsyncadd [#allocation3], 4294941696  ;;  %v3005_v0 = vld [vmem:[#allocation2 + $0x4] ss:$20 sps:$4 sm:$0xff]   ;;  %v3007_v1 = vld [vmem:[#allocation2] ss:$20 sps:$4 sm:$0xff]  }
  0x14   :  { %687 = vmatprep.subr.bf16.mxu0 %v3005_v0  ;;  %v3008_v2 = vld [vmem:[#allocation2 + $0x2c] ss:$20 sps:$4 sm:$0xff]   ;;  %v3010_v3 = vld [vmem:[#allocation2 + $0x28] ss:$20 sps:$4 sm:$0xff]   ;;  %v3013_v5 = vld [vmem:[#allocation2 + $0x50] ss:$20 sps:$4 sm:$0xff]  }
  0x15   :  { %688 = vmatpush1.bf16.msra.mxu0 %v3007_v1  ;;  %v3011_v4 = vld [vmem:[#allocation2 + $0x54] ss:$20 sps:$4 sm:$0xff]   ;;  %v3014_v6 = vld [vmem:[#allocation2 + $0x7c] ss:$20 sps:$4 sm:$0xff]   ;;  %v3016_v7 = vld [vmem:[#allocation2 + $0x78] ss:$20 sps:$4 sm:$0xff]  }
  0x16   :  { %689 = vmatprep.subr.bf16.mxu0 %v3008_v2  ;;  %v3017_v8 = vld [vmem:[#allocation2 + $0xa4] ss:$20 sps:$4 sm:$0xff]   ;;  %v3019_v9 = vld [vmem:[#allocation2 + $0xa0] ss:$20 sps:$4 sm:$0xff]   ;;  %v3022_v11 = vld [vmem:[#allocation2 + $0xc8] ss:$20 sps:$4 sm:$0xff]  }
  0x17   :  { %v3020_v10 = vld [vmem:[#allocation2 + $0xcc] ss:$20 sps:$4 sm:$0xff]   ;;  %v3023_v12 = vld [vmem:[#allocation2 + $0xf4] ss:$20 sps:$4 sm:$0xff]   ;;  %v3410_v14 = vld [vmem:[%s3732_s0 + $0x4] sm:$0xf] }
  0x18   :  { %v33_v13 = vld [vmem:[%s3732_s0] sm:$0xf]  ;;  %v3418_v16 = vld [vmem:[%s3732_s0 + $0x8] sm:$0xff]   ;;  %v3025_v17 = vld [vmem:[#allocation2 + $0xf0] ss:$20 sps:$4 sm:$0xff]   ;;  %vm124_vm1 = vcmask 1046528  }
  0x19   :  { %690 = vmatpush1.bf16.msra.mxu0 %v3010_v3  ;;  %v3413_v15 = vcombine.low %v33_v13, %v3410_v14  ;;  %v3026_v18 = vld [vmem:[#allocation2 + $0x11c] ss:$20 sps:$4 sm:$0xff]   ;;  %v83_v21 = vshll.u32 %v3418_v16, 16  ;;  %v3028_v24 = vld [vmem:[#allocation2 + $0x118] ss:$20 sps:$4 sm:$0xff]   ;;  %v126_v35 = vrot.slane %v3418_v16, 1 }
  0x1a   :  { %691 = vmatprep.subr.bf16.mxu0 %v3011_v4  ;;  %vm74_vm0 = vsmask.f32 7424  ;;  %v3029_v25 = vld [vmem:[#allocation2 + $0x144] ss:$20 sps:$4 sm:$0xff]   ;;  %v3031_v28 = vld [vmem:[#allocation2 + $0x140] ss:$20 sps:$4 sm:$0xff]  }
  0x1b   :  { %v76_v19 = vshrl.u32 %v3413_v15, 16  ;;  %v78_v20 = vshll.u32 %v3413_v15, 16  ;;  %v3423_v23 = vrot.slane %v83_v21, 1  ;;  %v3032_v29 = vld [vmem:[#allocation2 + $0x16c] ss:$20 sps:$4 sm:$0xff]   ;;  %v3430_v33 = vld [vmem:[%s3732_s0 + $0x10] sm:$0xff]  }
  0x1c   :  { %v3034_v30 = vld [vmem:[#allocation2 + $0x168] ss:$20 sps:$4 sm:$0xff]   ;;  %v3037_v32 = vld [vmem:[#allocation2 + $0x190] ss:$20 sps:$4 sm:$0xff]   ;;  %v128_v36 = vrot.slane %v3430_v33, 1  ;;  %v87_v42 = vshrl.u32 %v3418_v16, 16 }
  0x1d   :  { %692 = vmatpush1.bf16.msra.mxu0 %v3013_v5  ;;  %v80_v22 = vrot.slane %v78_v20, 1  ;;  %v3035_v31 = vld [vmem:[#allocation2 + $0x194] ss:$20 sps:$4 sm:$0xff]   ;;  %v3038_v34 = vld [vmem:[#allocation2 + $0x1bc] ss:$20 sps:$4 sm:$0xff]   ;;  %v182_v43 = vrot.slane %v3418_v16, 2 }
  0x1e   :  { %693 = vmatprep.subr.bf16.mxu0 %v3014_v6  ;;  %v3040_v37 = vld [vmem:[#allocation2 + $0x1b8] ss:$20 sps:$4 sm:$0xff]   ;;  %v3440_v39 = vsel %vm124_vm1, %v126_v35, %v128_v36  ;;  %v184_v44 = vrot.slane %v3430_v33, 2  ;;  %v3043_v45 = vld [vmem:[#allocation2 + $0x1e0] ss:$20 sps:$4 sm:$0xff]   ;;  %vm180_vm2 = vcmask 1045504  }
  0x1f   :  { %v81_v26 = vor.u32 %v80_v22, %v76_v19  ;;  %v3437_v38 = vld [vmem:[%s3732_s0 + $0x18] sm:$0xff]   ;;  %v42_v46 = vld [vmem:[%s3732_s0] sm:$0xe]  ;;  %v148_v50 = vrot.slane %v87_v42, 1  ;;  %v149_v51 = vrot.slane %v83_v21, 2  ;;  %v91_v3 = vshll.u32 %v3430_v33, 16 }
  0x20   :  { %v3041_v40 = vld [vmem:[#allocation2 + $0x1e4] ss:$20 sps:$4 sm:$0xff]   ;;  %v130_v41 = vrot.slane %v3437_v38, 1  ;;  %v3044_v48 = vld [vmem:[#allocation2 + $0x20c] ss:$20 sps:$4 sm:$0xff]   ;;  %v2537_v49 = vcombine.low %v42_v46, %v3410_v14  ;;  %v3456_v52 = vsel %vm180_vm2, %v182_v43, %v184_v44  ;;  %v186_v57 = vrot.slane %v3437_v38, 2 }
  0x21   :  { %694 = vmatpush1.bf16.msra.mxu0 %v3016_v7  ;;  %v86_v27 = vsel %vm74_vm0, %v81_v26, %v3423_v23  ;;  %v3046_v56 = vld [vmem:[#allocation2 + $0x208] ss:$20 sps:$4 sm:$0xff]   ;;  %v3459_v61 = vor.u32 %v149_v51, %v148_v50  ;;  %vm139_vm3 = vsmask.f32 6400  ;;  %v3049_v1 = vld [vmem:[#allocation2 + $0x230] ss:$20 sps:$4 sm:$0xff]   ;;  %v89_v7 = vor.u32 %v87_v42, %v3423_v23 }
  0x22   :  { %695 = vmatprep.subr.bf16.mxu0 %v3017_v8  ;;  %719 = vmatprep.mubr.bf16.mxu0 %v86_v27  ;;  %v3452_v47 = vsel %vm124_vm1, %v128_v36, %v130_v41  ;;  %v141_v53 = vshrl.u32 %v2537_v49, 16  ;;  %v144_v54 = vshll.u32 %v2537_v49, 16  ;;  %v125_v55 = vrot.slane %v2537_v49, 1  ;;  %v3047_v58 = vld [vmem:[#allocation2 + $0x234] ss:$20 sps:$4 sm:$0xff]  }
  0x23   :  { %v3467_v63 = vsel %vm180_vm2, %v184_v44, %v186_v57  ;;  %v3050_v2 = vld [vmem:[#allocation2 + $0x25c] ss:$20 sps:$4 sm:$0xff]   ;;  %v3052_v5 = vld [vmem:[#allocation2 + $0x258] ss:$20 sps:$4 sm:$0xff]   ;;  %v93_v8 = vrot.slane %v91_v3, 1  ;;  %v99_v19 = vshll.u32 %v3437_v38, 16 }
  0x24   :  { %v143_v59 = vrot.slane %v141_v53, 1  ;;  %v146_v60 = vrot.slane %v144_v54, 2  ;;  %v3462_v62 = vsel %vm124_vm1, %v125_v55, %v126_v35  ;;  %v3057_v6 = vld [vmem:[#allocation2 + $0x284] ss:$20 sps:$4 sm:$0xff]   ;;  %v3058_v20 = vld [vmem:[#allocation2 + $0x2a8] ss:$20 sps:$4 sm:$0xff]  }
  0x25   :  { %696 = vmatpush1.bf16.msra.mxu0 %v3019_v9  ;;  %v44_v9 = vld [vmem:[%s3732_s0] sm:$0xc]  ;;  %v3063_v22 = vld [vmem:[#allocation2 + $0x2d4] ss:$20 sps:$4 sm:$0xff]   ;;  %v3066_v26 = vld [vmem:[#allocation2 + $0x2fc] ss:$20 sps:$4 sm:$0xff]  }
  0x26   :  { %697 = vmatprep.subr.bf16.mxu0 %v3020_v10  ;;  %v147_v0 = vor.u32 %v146_v60, %v143_v59  ;;  %v3055_v10 = vld [vmem:[#allocation2 + $0x280] ss:$20 sps:$4 sm:$0xff]   ;;  %v3078_v42 = vld [vmem:[#allocation2 + $0x39c] ss:$20 sps:$4 sm:$0xff]   ;;  %v3076_v44 = vld [vmem:[#allocation2 + $0x398] ss:$20 sps:$4 sm:$0xff]  }
  0x27   :  { %v3072_v35 = vld [vmem:[#allocation2 + $0x34c] ss:$20 sps:$4 sm:$0xff]   ;;  %v153_v46 = vrot.slane %v91_v3, 2  ;;  %v3089_v51 = vld [vmem:[#allocation2 + $0x414] ss:$20 sps:$4 sm:$0xff]   ;;  %vm1018_vm4 = vcmask 523264  }
  0x28   :  { %v3472_v4 = vsel %vm139_vm3, %v147_v0, %v3459_v61  ;;  %v3080_v49 = vld [vmem:[#allocation2 + $0x3c0] ss:$20 sps:$4 sm:$0xff]   ;;  %v3087_v53 = vld [vmem:[#allocation2 + $0x410] ss:$20 sps:$4 sm:$0xff]   ;;  %v3090_v55 = vld [vmem:[#allocation2 + $0x438] ss:$20 sps:$4 sm:$0xff]  }
  0x29   :  { %698 = vmatpush1.bf16.msra.mxu0 %v3022_v11  ;;  %v2539_v11 = vcombine.low %v44_v9, %v3410_v14  ;;  %v3093_v14 = vld [vmem:[%s3732_s0 + $0x20] ss:$0 sps:$4 sm:$0x11]   ;;  %v3092_v54 = vld [vmem:[#allocation2 + $0x43c] ss:$20 sps:$4 sm:$0xff]   ;;  %vm1099_vm5 = vcmask 1044480  }
  0x2a   :  { %699 = vmatprep.subr.bf16.mxu0 %v3023_v12  ;;  %v3060_v12 = vld [vmem:[#allocation2 + $0x2ac] ss:$20 sps:$4 sm:$0xff]   ;;  %v3097_v60 = vld [vmem:[#allocation2 + $0x488] ss:$20 sps:$4 sm:$0xff]   ;;  %vm1110_vm6 = vcmask 1043456   ;;  %vm3364_vm7 = vmmov 0  }
  0x2b   :  { %v181_v13 = vrot.slane %v2539_v11, 2  ;;  %v3085_v50 = vld [vmem:[#allocation2 + $0x3ec] ss:$20 sps:$4 sm:$0xff]   ;;  %v3102_v0 = vld [vmem:[#allocation2 + $0x4b4] ss:$20 sps:$4 sm:$0xff]   ;;  %vm1813_vm8 = vcmask 1042432  }
  0x2c   :  { %v3099_v59 = vld [vmem:[#allocation2 + $0x48c] ss:$20 sps:$4 sm:$0xff]   ;;  %vm1809_vm9 = vcmask 187392   ;;  %vm2471_vm10 = vcmask 1041408   ;;  %vm2467_vm11 = vcmask 687104   ;;  %vm2515_vm12 = vcmask 74752  }
  0x2d   :  { %700 = vmatpush1.bf16.msra.mxu0 %v3025_v17  ;;  %v94_v17 = vsel %vm74_vm0, %v89_v7, %v93_v8  ;;  %v3483_v21 = vsel %vm180_vm2, %v181_v13, %v182_v43  ;;  %v111_v43 = vshrl.u32 %v3093_v14, 16  ;;  %v3103_v3 = vld [vmem:[#allocation2 + $0x4d8] ss:$20 sps:$4 sm:$0xff]   ;;  %v3119_v11 = vld [vmem:[%s3732_s0 + $0x20] ss:$0 sps:$4 sm:$0x33]  }
  0x2e   :  { %701 = vmatprep.subr.bf16.mxu0 %v3026_v18  ;;  %v95_v18 = vshrl.u32 %v3430_v33, 16  ;;  %v3112_v9 = vld [vmem:[#allocation2 + $0x52c] ss:$20 sps:$4 sm:$0xff]  }
  0x30   :  { %v97_v23 = vor.u32 %v95_v18, %v93_v8 }
  0x31   :  { %702 = vmatpush1.bf16.msra.mxu0 %v3028_v24  ;;  %v101_v24 = vrot.slane %v99_v19, 1 }
  0x32   :  { %703 = vmatprep.subr.bf16.mxu0 %v3029_v25  ;;  %v3061_v25 = vld [vmem:[#allocation2 + $0x2d0] ss:$20 sps:$4 sm:$0xff]  }
  0x33   :  { %v102_v27 = vsel %vm74_vm0, %v97_v23, %v101_v24 }
  0x35   :  { %704 = vmatpush1.bf16.msra.mxu0 %v3031_v28  ;;  %v107_v28 = vshll.u32 %v3093_v14, 16 }
  0x36   :  { %705 = vmatprep.subr.bf16.mxu0 %v3032_v29  ;;  %v3064_v29 = vld [vmem:[#allocation2 + $0x2f8] ss:$20 sps:$4 sm:$0xff]  }
  0x39   :  { %706 = vmatpush1.bf16.msra.mxu0 %v3034_v30  ;;  %v3069_v30 = vld [vmem:[#allocation2 + $0x324] ss:$20 sps:$4 sm:$0xff]  }
  0x3a   :  { %707 = vmatprep.subr.bf16.mxu0 %v3035_v31 }
  0x3d   :  { %708 = vmatpush1.bf16.msra.mxu0 %v3037_v32  ;;  %v109_v32 = vrot.slane %v107_v28, 1  ;;  %v132_v28 = vrot.slane %v3119_v11, 1 }
  0x3e   :  { %709 = vmatprep.subr.bf16.mxu0 %v3038_v34  ;;  %v3067_v34 = vld [vmem:[#allocation2 + $0x320] ss:$20 sps:$4 sm:$0xff]  }
  0x41   :  { %710 = vmatpush1.bf16.msra.mxu0 %v3040_v37  ;;  %v3070_v37 = vld [vmem:[#allocation2 + $0x348] ss:$20 sps:$4 sm:$0xff]  }
  0x42   :  { %711 = vmatprep.subr.bf16.mxu0 %v3041_v40  ;;  %v3075_v40 = vld [vmem:[#allocation2 + $0x374] ss:$20 sps:$4 sm:$0xff]  }
  0x45   :  { %712 = vmatpush1.bf16.msra.mxu0 %v3043_v45  ;;  %v152_v45 = vrot.slane %v95_v18, 1  ;;  %v161_v18 = vshrl.u32 %v3119_v11, 16 }
  0x46   :  { %713 = vmatprep.subr.bf16.mxu0 %v3044_v48  ;;  %v3082_v48 = vld [vmem:[#allocation2 + $0x3c4] ss:$20 sps:$4 sm:$0xff]  }
  0x49   :  { %714 = vmatpush1.bf16.msra.mxu0 %v3046_v56  ;;  %v3096_v56 = vld [vmem:[#allocation2 + $0x464] ss:$20 sps:$4 sm:$0xff]  }
  0x4a   :  { %715 = vmatprep.subr.bf16.mxu0 %v3047_v58  ;;  %v3094_v58 = vld [vmem:[#allocation2 + $0x460] ss:$20 sps:$4 sm:$0xff]  }
  0x4d   :  { %716 = vmatpush1.bf16.msra.mxu0 %v3049_v1  ;;  %v3100_v1 = vld [vmem:[#allocation2 + $0x4b0] ss:$20 sps:$4 sm:$0xff]  }
  0x4e   :  { %717 = vmatprep.subr.bf16.mxu0 %v3050_v2  ;;  %v3105_v2 = vld [vmem:[#allocation2 + $0x4dc] ss:$20 sps:$4 sm:$0xff]  }
  0x51   :  { %718 = vmatpush1.bf16.msra.mxu0 %v3052_v5  ;;  %v154_v5 = vor.u32 %v153_v46, %v152_v45 }
  0x52   :  { %768 = vmatprep.subr.bf16.mxu0 %v3057_v6  ;;  %v3107_v6 = vld [vmem:[#allocation2 + $0x500] ss:$20 sps:$4 sm:$0xff]  }
  0x53   :  { %v155_v8 = vsel %vm139_vm3, %v3459_v61, %v154_v5  ;;  %v3113_v61 = vld [vmem:[#allocation2 + $0x550] ss:$20 sps:$4 sm:$0xff]  }
  0x54   :  { %720 = vmatmul.mubr.bf16.vlgmr.msra.gmra.mrb[0].mxu0 %v3413_v15  ;;  %v103_v15 = vshrl.u32 %v3437_v38, 16 }
  0x55   :  { %769 = vmatpush1.bf16.msra.mxu0 %v3055_v10  ;;  %729 = vmatprep.mubr.bf16.mxu0 %v94_v17  ;;  %v157_v10 = vrot.slane %v99_v19, 2  ;;  %v3115_v17 = vld [vmem:[#allocation2 + $0x554] ss:$20 sps:$4 sm:$0xff]   ;;  %v3118_v19 = vld [vmem:[#allocation2 + $0x57c] ss:$20 sps:$4 sm:$0xff]  }
  0x56   :  { %770 = vmatprep.subr.bf16.mxu0 %v3060_v12  ;;  %v105_v31 = vor.u32 %v103_v15, %v101_v24  ;;  %v156_v7 = vrot.slane %v103_v15, 1  ;;  %v3110_v12 = vld [vmem:[#allocation2 + $0x528] ss:$20 sps:$4 sm:$0xff]   ;;  %v3125_v15 = vld [vmem:[#allocation2 + $0x5cc] ss:$20 sps:$4 sm:$0xff]  }
  0x58   :  { %v110_v36 = vsel %vm74_vm0, %v105_v31, %v109_v32  ;;  %v158_v13 = vor.u32 %v157_v10, %v156_v7  ;;  %v3126_v31 = vld [vmem:[#allocation2 + $0x5f0] ss:$20 sps:$4 sm:$0xff]  }
  0x59   :  { %771 = vmatpush1.bf16.msra.mxu0 %v3058_v20  ;;  %v164_v20 = vshll.u32 %v3119_v11, 16  ;;  %v3131_v32 = vld [vmem:[#allocation2 + $0x61c] ss:$20 sps:$4 sm:$0xff]  }
  0x5a   :  { %772 = vmatprep.subr.bf16.mxu0 %v3063_v22  ;;  %v159_v22 = vsel %vm139_vm3, %v154_v5, %v158_v13 }
  0x5b   :  { %v166_v23 = vrot.slane %v164_v20, 2 }
  0x5c   :  { %730 = vmatmul.mubr.bf16.gmra.mrb[4].mxu0 %v3418_v16  ;;  %v3073_v16 = vld [vmem:[#allocation2 + $0x370] ss:$20 sps:$4 sm:$0xff]  }
  0x5d   :  { %773 = vmatpush1.bf16.msra.mxu0 %v3061_v25  ;;  %739 = vmatprep.mubr.bf16.mxu0 %v102_v27  ;;  %v3122_v25 = vld [vmem:[#allocation2 + $0x5a4] ss:$20 sps:$4 sm:$0xff]  }
  0x5e   :  { %774 = vmatprep.subr.bf16.mxu0 %v3066_v26  ;;  %v3120_v26 = vld [vmem:[#allocation2 + $0x5a0] ss:$20 sps:$4 sm:$0xff]  }
  0x61   :  { %775 = vmatpush1.bf16.msra.mxu0 %v3064_v29  ;;  %v3123_v29 = vld [vmem:[#allocation2 + $0x5c8] ss:$20 sps:$4 sm:$0xff]  }
  0x62   :  { %776 = vmatprep.subr.bf16.mxu0 %v3069_v30  ;;  %v133_v30 = vsel %vm124_vm1, %v130_v41, %v132_v28  ;;  %v3133_v41 = vld [vmem:[%s3732_s0 + $0x20] ss:$0 sps:$4 sm:$0x77]  }
  0x64   :  { %740 = vmatmul.mubr.bf16.gmra.mrb[8].mxu0 %v3430_v33  ;;  %v3083_v33 = vld [vmem:[#allocation2 + $0x3e8] ss:$20 sps:$4 sm:$0xff]  }
  0x65   :  { %777 = vmatpush1.bf16.msra.mxu0 %v3067_v34  ;;  %749 = vmatprep.mubr.bf16.mxu0 %v110_v36  ;;  %v3129_v34 = vld [vmem:[#allocation2 + $0x618] ss:$20 sps:$4 sm:$0xff]  }
  0x66   :  { %778 = vmatprep.subr.bf16.mxu0 %v3072_v35  ;;  %v188_v35 = vrot.slane %v3133_v41, 2 }
  0x68   :  { %v189_v36 = vsel %vm180_vm2, %v186_v57, %v188_v35 }
  0x69   :  { %779 = vmatpush1.bf16.msra.mxu0 %v3070_v37 }
  0x6a   :  { %780 = vmatprep.subr.bf16.mxu0 %v3075_v40 }
  0x6c   :  { %750 = vmatmul.mubr.bf16.gmra.mrb[12].mxu0 %v3437_v38  ;;  %v275_v38 = vld [vmem:[%s3735_s3] ss:$8 sm:$0x3] }
  0x6d   :  { %781 = vmatpush1.bf16.msra.mxu0 %v3073_v16  ;;  %759 = vmatprep.mubr.bf16.mxu0 %v111_v43 }
  0x6e   :  { %782 = vmatprep.subr.bf16.mxu0 %v3078_v42 }
  0x71   :  { %783 = vmatpush1.bf16.msra.mxu0 %v3076_v44 }
  0x72   :  { %784 = vmatprep.subr.bf16.mxu0 %v3082_v48 }
  0x74   :  { %760 = vmatmul.mubr.bf16.gmra.mrb[16].mxu0 %v3093_v14  ;;  %v163_v14 = vrot.slane %v161_v18, 1 }
  0x75   :  { %785 = vmatpush1.bf16.msra.mxu0 %v3080_v49  ;;  %800 = vmatprep.mubr.bf16.mxu0 %v3472_v4  ;;  %v3109_v4 = vld [vmem:[#allocation2 + $0x504] ss:$20 sps:$4 sm:$0xff]  }
  0x76   :  { %786 = vmatprep.subr.bf16.mxu0 %v3085_v50  ;;  %v167_v24 = vor.u32 %v166_v23, %v163_v14 }
  0x78   :  { %v168_v27 = vsel %vm139_vm3, %v158_v13, %v167_v24 }
  0x79   :  { %787 = vmatpush1.bf16.msra.mxu0 %v3083_v33 }
  0x7a   :  { %788 = vmatprep.subr.bf16.mxu0 %v3089_v51 }
  0x7d   :  { %789 = vmatpush1.bf16.msra.mxu0 %v3087_v53 }
  0x7e   :  { %790 = vmatprep.subr.bf16.mxu0 %v3092_v54 }
  0x81   :  { %791 = vmatpush1.bf16.msra.mxu0 %v3090_v55 }
  0x82   :  { %792 = vmatprep.subr.bf16.mxu0 %v3096_v56 }
  0x85   :  { %793 = vmatpush1.bf16.msra.mxu0 %v3094_v58 }
  0x86   :  { %794 = vmatprep.subr.bf16.mxu0 %v3099_v59 }
  0x89   :  { %795 = vmatpush1.bf16.msra.mxu0 %v3097_v60 }
  0x8a   :  { %796 = vmatprep.subr.bf16.mxu0 %v3102_v0 }
  0x8d   :  { %797 = vmatpush1.bf16.msra.mxu0 %v3100_v1 }
  0x8e   :  { %798 = vmatprep.subr.bf16.mxu0 %v3105_v2 }
  0x91   :  { %799 = vmatpush1.bf16.msra.mxu0 %v3103_v3 }
  0x92   :  { %849 = vmatprep.subr.bf16.mxu0 %v3109_v4 }
  0x94   :  { %801 = vmatmul.mubr.bf16.vlgmr.msra.gmra.mrb[0].mxu0 %v3462_v62  ;;  %v3116_v62 = vld [vmem:[#allocation2 + $0x578] ss:$20 sps:$4 sm:$0xff]  }
  0x95   :  { %810 = vmatprep.mubr.bf16.mxu0 %v155_v8  ;;  %850 = vmatpush1.bf16.msra.mxu0 %v3107_v6 }
  0x96   :  { %851 = vmatprep.subr.bf16.mxu0 %v3112_v9 }
  0x99   :  { %852 = vmatpush1.bf16.msra.mxu0 %v3110_v12 }
  0x9a   :  { %853 = vmatprep.subr.bf16.mxu0 %v3115_v17 }
  0x9c   :  { %811 = vmatmul.mubr.bf16.gmra.mrb[4].mxu0 %v3440_v39  ;;  %v3128_v39 = vld [vmem:[#allocation2 + $0x5f4] ss:$20 sps:$4 sm:$0xff]  }
  0x9d   :  { %820 = vmatprep.mubr.bf16.mxu0 %v159_v22  ;;  %854 = vmatpush1.bf16.msra.mxu0 %v3113_v61 }
  0x9e   :  { %855 = vmatprep.subr.bf16.mxu0 %v3118_v19 }
  0xa1   :  { %856 = vmatpush1.bf16.msra.mxu0 %v3116_v62 }
  0xa2   :  { %857 = vmatprep.subr.bf16.mxu0 %v3122_v25 }
  0xa4   :  { %821 = vmatmul.mubr.bf16.gmra.mrb[8].mxu0 %v3452_v47  ;;  %v3362_v47 = vmov 0  }
  0xa5   :  { %830 = vmatprep.mubr.bf16.mxu0 %v168_v27  ;;  %858 = vmatpush1.bf16.msra.mxu0 %v3120_v26 }
  0xa6   :  { %859 = vmatprep.subr.bf16.mxu0 %v3125_v15 }
  0xa9   :  { %860 = vmatpush1.bf16.msra.mxu0 %v3123_v29 }
  0xaa   :  { %861 = vmatprep.subr.bf16.mxu0 %v3128_v39 }
  0xac   :  { %831 = vmatmul.mubr.bf16.gmra.mrb[12].mxu0 %v133_v30 }
  0xad   :  { %840 = vmatprep.mubr.bf16.mxu0 %v163_v14  ;;  %862 = vmatpush1.bf16.msra.mxu0 %v3126_v31 }
  0xae   :  { %863 = vmatprep.subr.bf16.mxu0 %v3131_v32 }
  0xb1   :  { %864 = vmatpush1.bf16.msra.mxu0 %v3129_v34 }
  0xb4   :  { %841 = vmatmul.mubr.bf16.gmra.mrb[16].mxu0 %v132_v28 }
  0xb5   :  { %881 = vmatprep.mubr.bf16.mxu0 %v3362_v47 }
  0xbc   :  { %882 = vmatmul.mubr.bf16.vlgmr.msra.gmra.mrb[0].mxu0 %v3483_v21  ;;  %v277_v21 = vlaneseq }
  0xbd   :  { %891 = vmatprep.mubr.bf16.mxu0 %v3362_v47 }
  0xc4   :  { %892 = vmatmul.mubr.bf16.gmra.mrb[4].mxu0 %v3456_v52  ;;  %v3134_v52 = vld [vmem:[%s3734_s2] sm:$0xff]  }
  0xc5   :  { %901 = vmatprep.mubr.bf16.mxu0 %v3362_v47  ;;  %2849 = vmatprep.mubr.msk.bf16.mxu1 %vm1018_vm4, %v3134_v52 }
  0xcc   :  { %902 = vmatmul.mubr.bf16.gmra.mrb[8].mxu0 %v3467_v63  ;;  %v3535_v63 = vshrl.u32 %v277_v21, 7 }
  0xcd   :  { %911 = vmatprep.mubr.bf16.mxu0 %v3362_v47 }
  0xce   :  { %v279_v37 = vsub.s32 0, %v3535_v63  ;;  %v283_v57 = vsub.s32 1, %v3535_v63 }
  0xd0   :  { %v3544_v40 = vrot.slane %v275_v38, %v279_v37  ;;  %v3548_v16 = vrot.slane %v275_v38, %v283_v57 }
  0xd4   :  { %912 = vmatmul.mubr.bf16.gmra.mrb[12].mxu0 %v189_v36 }
  0xd5   :  { %921 = vmatprep.mubr.bf16.mxu0 %v3362_v47 }
  0xdc   :  { %922 = vmatmul.mubr.bf16.gmra.mrb[16].mxu0 %v188_v35 }
 0x18f   :  { %v883_v42 = vpop.f32.mrb[0].mxu0 }
 0x190   :  { %v2917_v43 = vadd.f32 %v883_v42, %v3544_v40  ;;  %v885_v44 = vpop.f32.mrb[1].mxu0 }
 0x191   :  { %v2918_v45 = vadd.f32 %v885_v44, %v3548_v16  ;;  %v887_v46 = vpop.f32.mrb[2].mxu0 }
 0x192   :  { %v930_v48 = vmax.f32 %v2917_v43, 0.0  ;;  %v2919_v49 = vadd.f32 %v887_v46, %v3544_v40  ;;  %v889_v50 = vpop.f32.mrb[3].mxu0 }
 0x193   :  { %v931_v33 = vmax.f32 %v2918_v45, 0.0  ;;  %v2920_v51 = vadd.f32 %v889_v50, %v3548_v16 }
 0x194   :  { %v932_v53 = vmax.f32 %v2919_v49, 0.0 }
 0x195   :  { %v948_v54 = vmax.f32 %v930_v48, %v931_v33  ;;  %v933_v55 = vmax.f32 %v2920_v51, 0.0 }
 0x197   :  { %v949_v56 = vmax.f32 %v932_v53, %v933_v55  ;;  %v893_v58 = vpop.f32.mrb[4].mxu0  ;;  %v967_v0 = vrot.slane %v948_v54, 1 }
 0x198   :  { %v2921_v59 = vadd.f32 %v893_v58, %v3544_v40  ;;  %v895_v60 = vpop.f32.mrb[5].mxu0 }
 0x199   :  { %v968_v1 = vrot.slane %v949_v56, 1  ;;  %v2922_v2 = vadd.f32 %v895_v60, %v3548_v16  ;;  %v897_v3 = vpop.f32.mrb[6].mxu0 }
 0x19a   :  { %v934_v4 = vmax.f32 %v2921_v59, 0.0  ;;  %v2923_v5 = vadd.f32 %v897_v3, %v3544_v40  ;;  %v899_v6 = vpop.f32.mrb[7].mxu0 }
 0x19b   :  { %v935_v7 = vmax.f32 %v2922_v2, 0.0  ;;  %v2924_v8 = vadd.f32 %v899_v6, %v3548_v16  ;;  %v969_v9 = vsel %vm124_vm1, %v967_v0, %v968_v1 }
 0x19c   :  { %v936_v10 = vmax.f32 %v2923_v5, 0.0  ;;  %v992_v11 = vmax.f32 %v948_v54, %v969_v9 }
 0x19d   :  { %v950_v12 = vmax.f32 %v934_v4, %v935_v7  ;;  %v937_v13 = vmax.f32 %v2924_v8, 0.0 }
 0x19f   :  { %v970_v17 = vrot.slane %v950_v12, 1  ;;  %v951_v18 = vmax.f32 %v936_v10, %v937_v13  ;;  %v903_v20 = vpop.f32.mrb[8].mxu0 }
 0x1a0   :  { %v2925_v61 = vadd.f32 %v903_v20, %v3544_v40  ;;  %v905_v22 = vpop.f32.mrb[9].mxu0 }
 0x1a1   :  { %v972_v19 = vrot.slane %v951_v18, 1  ;;  %v2926_v14 = vadd.f32 %v905_v22, %v3548_v16  ;;  %v907_v23 = vpop.f32.mrb[10].mxu0  ;;  %v971_v62 = vsel %vm124_vm1, %v968_v1, %v970_v17  ;;  %v3135_v22 = vld [vmem:[%s3734_s2 + $0x8] sm:$0x3f]  }
 0x1a2   :  { %v938_v24 = vmax.f32 %v2925_v61, 0.0  ;;  %v2927_v25 = vadd.f32 %v907_v23, %v3544_v40  ;;  %v909_v26 = vpop.f32.mrb[11].mxu0  ;;  %v993_v27 = vmax.f32 %v949_v56, %v971_v62  ;;  %v3139_v23 = vld [vmem:[#allocation2 + $0x30] ss:$20 sps:$4 sm:$0xff]  }
 0x1a3   :  { %v939_v15 = vmax.f32 %v2926_v14, 0.0  ;;  %v2928_v28 = vadd.f32 %v909_v26, %v3548_v16  ;;  %v973_v29 = vsel %vm124_vm1, %v970_v17, %v972_v19  ;;  %v3141_v14 = vld [vmem:[#allocation2 + $0x34] ss:$20 sps:$4 sm:$0xff]   ;;  %v3144_v62 = vld [vmem:[#allocation2 + $0x5c] ss:$20 sps:$4 sm:$0xff]  }
 0x1a4   :  { %v940_v39 = vmax.f32 %v2927_v25, 0.0  ;;  %v1000_v30 = vpack.c.bf16 %v993_v27, %v992_v11  ;;  %v994_v31 = vmax.f32 %v950_v12, %v973_v29  ;;  %v3147_v25 = vld [vmem:[#allocation2 + $0x84] ss:$20 sps:$4 sm:$0xff]   ;;  %v3145_v26 = vld [vmem:[#allocation2 + $0x80] ss:$20 sps:$4 sm:$0xff]  }
 0x1a5   :  { %v952_v32 = vmax.f32 %v938_v24, %v939_v15  ;;  %v941_v34 = vmax.f32 %v2928_v28, 0.0  ;;  %v3142_v24 = vld [vmem:[#allocation2 + $0x58] ss:$20 sps:$4 sm:$0xff]   ;;  %v3148_v15 = vld [vmem:[#allocation2 + $0xa8] ss:$20 sps:$4 sm:$0xff]  }
 0x1a6   :  { %2841 = vmatprep.subr.bf16.mxu1 %v1000_v30  ;;  %v3150_v27 = vld [vmem:[#allocation2 + $0xac] ss:$20 sps:$4 sm:$0xff]   ;;  %v3153_v28 = vld [vmem:[#allocation2 + $0xd4] ss:$20 sps:$4 sm:$0xff]   ;;  %v3151_v29 = vld [vmem:[#allocation2 + $0xd0] ss:$20 sps:$4 sm:$0xff]  }
 0x1a7   :  { %v974_v41 = vrot.slane %v952_v32, 1  ;;  %v953_v35 = vmax.f32 %v940_v39, %v941_v34  ;;  %v913_v36 = vpop.f32.mrb[12].mxu0  ;;  %2842 = vmatpush3.bf16.msra.mxu1 %v1000_v30  ;;  %v3156_v39 = vld [vmem:[#allocation2 + $0xfc] ss:$20 sps:$4 sm:$0xff]   ;;  %v3154_v30 = vld [vmem:[#allocation2 + $0xf8] ss:$20 sps:$4 sm:$0xff]  }
 0x1a8   :  { %v2929_v52 = vadd.f32 %v913_v36, %v3544_v40  ;;  %v915_v21 = vpop.f32.mrb[13].mxu0  ;;  %v3162_v34 = vld [vmem:[#allocation2 + $0x14c] ss:$20 sps:$4 sm:$0xff]   ;;  %v3163_v36 = vld [vmem:[#allocation2 + $0x170] ss:$20 sps:$4 sm:$0xff]  }
 0x1a9   :  { %v976_v38 = vrot.slane %v953_v35, 1  ;;  %v2930_v42 = vadd.f32 %v915_v21, %v3548_v16  ;;  %v917_v43 = vpop.f32.mrb[14].mxu0  ;;  %v975_v44 = vsel %vm124_vm1, %v972_v19, %v974_v41  ;;  %v3136_v19 = vld [vmem:[#allocation2 + $0x8] ss:$20 sps:$4 sm:$0xff]   ;;  %v3166_v21 = vld [vmem:[#allocation2 + $0x198] ss:$20 sps:$4 sm:$0xff]  }
 0x1aa   :  { %v942_v45 = vmax.f32 %v2929_v52, 0.0  ;;  %v2931_v46 = vadd.f32 %v917_v43, %v3544_v40  ;;  %v919_v48 = vpop.f32.mrb[15].mxu0  ;;  %v995_v49 = vmax.f32 %v951_v18, %v975_v44  ;;  %v3168_v52 = vld [vmem:[#allocation2 + $0x19c] ss:$20 sps:$4 sm:$0xff]   ;;  %v3174_v43 = vld [vmem:[#allocation2 + $0x1ec] ss:$20 sps:$4 sm:$0xff]  }
 0x1ab   :  { %v943_v50 = vmax.f32 %v2930_v42, 0.0  ;;  %v2932_v33 = vadd.f32 %v919_v48, %v3548_v16  ;;  %v977_v51 = vsel %vm124_vm1, %v974_v41, %v976_v38  ;;  %v3160_v41 = vld [vmem:[#allocation2 + $0x148] ss:$20 sps:$4 sm:$0xff]   ;;  %v3169_v42 = vld [vmem:[#allocation2 + $0x1c0] ss:$20 sps:$4 sm:$0xff]  }
 0x1ac   :  { %v944_v53 = vmax.f32 %v2931_v46, 0.0  ;;  %v1001_v54 = vpack.c.bf16 %v995_v49, %v994_v31  ;;  %v996_v55 = vmax.f32 %v952_v32, %v977_v51  ;;  %v3159_v31 = vld [vmem:[#allocation2 + $0x124] ss:$20 sps:$4 sm:$0xff]   ;;  %v3157_v32 = vld [vmem:[#allocation2 + $0x120] ss:$20 sps:$4 sm:$0xff]  }
 0x1ad   :  { %v954_v56 = vmax.f32 %v942_v45, %v943_v50  ;;  %v945_v58 = vmax.f32 %v2932_v33, 0.0  ;;  %v3172_v44 = vld [vmem:[#allocation2 + $0x1e8] ss:$20 sps:$4 sm:$0xff]   ;;  %v3175_v46 = vld [vmem:[#allocation2 + $0x210] ss:$20 sps:$4 sm:$0xff]  }
 0x1ae   :  { %2843 = vmatprep.subr.bf16.mxu1 %v1001_v54  ;;  %v3177_v45 = vld [vmem:[#allocation2 + $0x214] ss:$20 sps:$4 sm:$0xff]   ;;  %v3180_v48 = vld [vmem:[#allocation2 + $0x23c] ss:$20 sps:$4 sm:$0xff]   ;;  %v3178_v49 = vld [vmem:[#allocation2 + $0x238] ss:$20 sps:$4 sm:$0xff]  }
 0x1af   :  { %v978_v59 = vrot.slane %v954_v56, 1  ;;  %v955_v60 = vmax.f32 %v944_v53, %v945_v58  ;;  %v923_v0 = vpop.f32.mrb[16].mxu0  ;;  %2844 = vmatpush3.bf16.msra.mxu1 %v1001_v54  ;;  %v3183_v50 = vld [vmem:[#allocation2 + $0x264] ss:$20 sps:$4 sm:$0xff]   ;;  %v3181_v33 = vld [vmem:[#allocation2 + $0x260] ss:$20 sps:$4 sm:$0xff]  }
 0x1b0   :  { %v2933_v1 = vadd.f32 %v923_v0, %v3544_v40  ;;  %v925_v2 = vpop.f32.mrb[17].mxu0  ;;  %v3186_v51 = vld [vmem:[#allocation2 + $0x28c] ss:$20 sps:$4 sm:$0xff]  }
 0x1b1   :  { %v980_v3 = vrot.slane %v955_v60, 1  ;;  %v2934_v4 = vadd.f32 %v925_v2, %v3548_v16  ;;  %v927_v5 = vpop.f32.mrb[18].mxu0  ;;  %v979_v6 = vsel %vm124_vm1, %v976_v38, %v978_v59  ;;  %v3138_v16 = vld [vmem:[#allocation2 + $0xc] ss:$20 sps:$4 sm:$0xff]   ;;  %v3171_v38 = vld [vmem:[#allocation2 + $0x1c4] ss:$20 sps:$4 sm:$0xff]  }
 0x1b2   :  { %v946_v7 = vmax.f32 %v2933_v1, 0.0  ;;  %v928_v8 = vpop.f32.mrb[19].mxu0  ;;  %v997_v9 = vmax.f32 %v953_v35, %v979_v6  ;;  %v3165_v35 = vld [vmem:[#allocation2 + $0x174] ss:$20 sps:$4 sm:$0xff]  }
 0x1b3   :  { %v947_v10 = vmax.f32 %v2934_v4, 0.0  ;;  %v981_v11 = vsel %vm124_vm1, %v978_v59, %v980_v3 }
 0x1b4   :  { %v1002_v12 = vpack.c.bf16 %v997_v9, %v996_v55  ;;  %v998_v13 = vmax.f32 %v954_v56, %v981_v11 }
 0x1b5   :  { %v956_v17 = vmax.f32 %v946_v7, %v947_v10 }
 0x1b6   :  { %2845 = vmatprep.subr.bf16.mxu1 %v1002_v12 }
 0x1b7   :  { %v982_v18 = vrot.slane %v956_v17, 1  ;;  %2846 = vmatpush3.bf16.msra.mxu1 %v1002_v12 }
 0x1b9   :  { %v983_v40 = vsel %vm124_vm1, %v980_v3, %v982_v18 }
 0x1ba   :  { %v999_v20 = vmax.f32 %v955_v60, %v983_v40 }
 0x1bc   :  { %v1003_v61 = vpack.c.bf16 %v999_v20, %v998_v13 }
 0x1be   :  { %2847 = vmatprep.subr.bf16.mxu1 %v1003_v61 }
 0x1bf   :  { %2848 = vmatpush3.bf16.msra.mxu1 %v1003_v61 }
 0x1c0   :  { %1624 = vmatprep.subr.bf16.mxu1 %v3138_v16 }
 0x1c2   :  { %2850 = vmatmul.mubr.msk.bf16.vlgmr.msra.gmra.mrb[0].mxu1 %vm1018_vm4, %v3135_v22  ;;  %v3184_v22 = vld [vmem:[#allocation2 + $0x288] ss:$20 sps:$4 sm:$0xff]  }
 0x1c3   :  { %1625 = vmatpush1.bf16.msra.mxu1 %v3136_v19 }
 0x1c4   :  { %1626 = vmatprep.subr.bf16.mxu1 %v3141_v14 }
 0x1c7   :  { %1627 = vmatpush1.bf16.msra.mxu1 %v3139_v23 }
 0x1c8   :  { %1628 = vmatprep.subr.bf16.mxu1 %v3144_v62  ;;  %v3189_v62 = vld [vmem:[#allocation2 + $0x2b4] ss:$20 sps:$4 sm:$0xff]  }
 0x1cb   :  { %1629 = vmatpush1.bf16.msra.mxu1 %v3142_v24 }
 0x1cc   :  { %1630 = vmatprep.subr.bf16.mxu1 %v3147_v25 }
 0x1cf   :  { %1631 = vmatpush1.bf16.msra.mxu1 %v3145_v26 }
 0x1d0   :  { %1632 = vmatprep.subr.bf16.mxu1 %v3150_v27 }
 0x1d3   :  { %1633 = vmatpush1.bf16.msra.mxu1 %v3148_v15 }
 0x1d4   :  { %1634 = vmatprep.subr.bf16.mxu1 %v3153_v28 }
 0x1d7   :  { %1635 = vmatpush1.bf16.msra.mxu1 %v3151_v29 }
 0x1d8   :  { %1636 = vmatprep.subr.bf16.mxu1 %v3156_v39 }
 0x1db   :  { %1637 = vmatpush1.bf16.msra.mxu1 %v3154_v30  ;;  %v3187_v30 = vld [vmem:[#allocation2 + $0x2b0] ss:$20 sps:$4 sm:$0xff]  }
 0x1dc   :  { %1638 = vmatprep.subr.bf16.mxu1 %v3159_v31  ;;  %v3192_v31 = vld [vmem:[#allocation2 + $0x2dc] ss:$20 sps:$4 sm:$0xff]  }
 0x1df   :  { %1639 = vmatpush1.bf16.msra.mxu1 %v3157_v32  ;;  %v3190_v32 = vld [vmem:[#allocation2 + $0x2d8] ss:$20 sps:$4 sm:$0xff]  }
 0x1e0   :  { %1640 = vmatprep.subr.bf16.mxu1 %v3162_v34 }
 0x1e3   :  { %1641 = vmatpush1.bf16.msra.mxu1 %v3160_v41  ;;  %v3195_v41 = vld [vmem:[#allocation2 + $0x304] ss:$20 sps:$4 sm:$0xff]  }
 0x1e4   :  { %1642 = vmatprep.subr.bf16.mxu1 %v3165_v35  ;;  %v3193_v35 = vld [vmem:[#allocation2 + $0x300] ss:$20 sps:$4 sm:$0xff]  }
 0x1e7   :  { %1643 = vmatpush1.bf16.msra.mxu1 %v3163_v36  ;;  %v3198_v36 = vld [vmem:[#allocation2 + $0x32c] ss:$20 sps:$4 sm:$0xff]  }
 0x1e8   :  { %1644 = vmatprep.subr.bf16.mxu1 %v3168_v52  ;;  %v3196_v52 = vld [vmem:[#allocation2 + $0x328] ss:$20 sps:$4 sm:$0xff]  }
 0x1eb   :  { %1645 = vmatpush1.bf16.msra.mxu1 %v3166_v21  ;;  %v3201_v21 = vld [vmem:[#allocation2 + $0x354] ss:$20 sps:$4 sm:$0xff]  }
 0x1ec   :  { %1646 = vmatprep.subr.bf16.mxu1 %v3171_v38  ;;  %v3199_v38 = vld [vmem:[#allocation2 + $0x350] ss:$20 sps:$4 sm:$0xff]  }
 0x1ef   :  { %1647 = vmatpush1.bf16.msra.mxu1 %v3169_v42  ;;  %v3204_v42 = vld [vmem:[#allocation2 + $0x37c] ss:$20 sps:$4 sm:$0xff]  }
 0x1f0   :  { %1648 = vmatprep.subr.bf16.mxu1 %v3174_v43  ;;  %v3202_v43 = vld [vmem:[#allocation2 + $0x378] ss:$20 sps:$4 sm:$0xff]  }
 0x1f3   :  { %1649 = vmatpush1.bf16.msra.mxu1 %v3172_v44  ;;  %v3207_v44 = vld [vmem:[#allocation2 + $0x3a4] ss:$20 sps:$4 sm:$0xff]  }
 0x1f4   :  { %1650 = vmatprep.subr.bf16.mxu1 %v3177_v45  ;;  %v3205_v45 = vld [vmem:[#allocation2 + $0x3a0] ss:$20 sps:$4 sm:$0xff]  }
 0x1f7   :  { %1651 = vmatpush1.bf16.msra.mxu1 %v3175_v46  ;;  %v3210_v46 = vld [vmem:[#allocation2 + $0x3cc] ss:$20 sps:$4 sm:$0xff]  }
 0x1f8   :  { %1652 = vmatprep.subr.bf16.mxu1 %v3180_v48  ;;  %v3208_v48 = vld [vmem:[#allocation2 + $0x3c8] ss:$20 sps:$4 sm:$0xff]  }
 0x1fb   :  { %1653 = vmatpush1.bf16.msra.mxu1 %v3178_v49  ;;  %v3213_v49 = vld [vmem:[#allocation2 + $0x3f4] ss:$20 sps:$4 sm:$0xff]  }
 0x1fc   :  { %1654 = vmatprep.subr.bf16.mxu1 %v3183_v50  ;;  %v3211_v50 = vld [vmem:[#allocation2 + $0x3f0] ss:$20 sps:$4 sm:$0xff]  }
 0x1ff   :  { %1655 = vmatpush1.bf16.msra.mxu1 %v3181_v33  ;;  %v3216_v33 = vld [vmem:[#allocation2 + $0x41c] ss:$20 sps:$4 sm:$0xff]  }
 0x200   :  { %1675 = vmatprep.subr.bf16.mxu1 %v3186_v51  ;;  %v3214_v51 = vld [vmem:[#allocation2 + $0x418] ss:$20 sps:$4 sm:$0xff]  }
 0x295   :  { %v2851_v53 = vpop.f32.mrb[0].mxu1 }
 0x296   :  { %v1081_v54 = vrot.slane %v2851_v53, 1  ;;  %v1092_v55 = vrot.slane %v2851_v53, 2  ;;  %v1059_v56 = vpop.f32.mrb[1].mxu1  ;;  %v1103_v58 = vrot.slane %v2851_v53, 3  ;;  %v1114_v59 = vrot.slane %v2851_v53, 4 }
 0x297   :  { %v1078_v60 = vrot.slane %v1059_v56, 1  ;;  %v1089_v0 = vrot.slane %v1059_v56, 2  ;;  %v2852_v1 = vpop.f32.mrb[2].mxu1  ;;  %v1100_v2 = vrot.slane %v1059_v56, 3  ;;  %v1111_v18 = vrot.slane %v1059_v56, 4 }
 0x298   :  { %v1083_v3 = vrot.slane %v2852_v1, 1  ;;  %v1094_v4 = vrot.slane %v2852_v1, 2  ;;  %v1105_v5 = vrot.slane %v2852_v1, 3  ;;  %v1062_v6 = vpop.f32.mrb[3].mxu1  ;;  %v1116_v7 = vrot.slane %v2852_v1, 4 }
 0x299   :  { %v1079_v8 = vrot.slane %v1062_v6, 1  ;;  %v1090_v9 = vrot.slane %v1062_v6, 2  ;;  %v1101_v10 = vrot.slane %v1062_v6, 3  ;;  %v1112_v11 = vrot.slane %v1062_v6, 4  ;;  %v3231_v1 = vld [vmem:[#allocation2 + $0x4e4] ss:$20 sps:$4 sm:$0xff]  }
 0x29a   :  { %v1121_v12 = vpack.c.bf16 %v1062_v6, %v1059_v56  ;;  %v1084_v13 = vsel %vm124_vm1, %v1081_v54, %v1083_v3  ;;  %v3582_v17 = vsel %vm1099_vm5, %v1103_v58, %v1105_v5  ;;  %v3597_v26 = vsel %vm180_vm2, %v1092_v55, %v1094_v4  ;;  %v3220_v56 = vld [vmem:[#allocation2 + $0x468] ss:$20 sps:$4 sm:$0xff]   ;;  %v3234_v3 = vld [vmem:[#allocation2 + $0x50c] ss:$20 sps:$4 sm:$0xff]  }
 0x29b   :  { %v1080_v40 = vsel %vm124_vm1, %v1078_v60, %v1079_v8  ;;  %v1082_v20 = vsel %vm124_vm1, %v1079_v8, %v1081_v54  ;;  %v1102_v61 = vsel %vm1099_vm5, %v1100_v2, %v1101_v10  ;;  %v1104_v19 = vsel %vm1099_vm5, %v1101_v10, %v1103_v58  ;;  %v3217_v54 = vld [vmem:[#allocation2 + $0x440] ss:$20 sps:$4 sm:$0xff]   ;;  %v3228_v60 = vld [vmem:[#allocation2 + $0x4bc] ss:$20 sps:$4 sm:$0xff]  }
 0x29c   :  { %v1122_v16 = vpack.c.bf16 %v1082_v20, %v1080_v40  ;;  %v3589_v14 = vsel %vm180_vm2, %v1089_v0, %v1090_v9  ;;  %v3592_v23 = vsel %vm180_vm2, %v1090_v9, %v1092_v55  ;;  %v1124_v24 = vpack.c.bf16 %v1104_v19, %v1102_v61  ;;  %v3222_v55 = vld [vmem:[#allocation2 + $0x46c] ss:$20 sps:$4 sm:$0xff]   ;;  %v3225_v58 = vld [vmem:[#allocation2 + $0x494] ss:$20 sps:$4 sm:$0xff]   ;;  %v3240_v8 = vld [vmem:[#allocation2 + $0x55c] ss:$20 sps:$4 sm:$0xff]  }
 0x29d   :  { %v1123_v25 = vpack.c.bf16 %v3592_v23, %v3589_v14  ;;  %v1127_v27 = vpack.c.bf16 %v1084_v13, %v1084_v13  ;;  %v3600_v15 = vsel %vm1110_vm6, %v1111_v18, %v1112_v11  ;;  %v3603_v28 = vsel %vm1110_vm6, %v1112_v11, %v1114_v59  ;;  %v3226_v0 = vld [vmem:[#allocation2 + $0x4b8] ss:$20 sps:$4 sm:$0xff]   ;;  %v3229_v2 = vld [vmem:[#allocation2 + $0x4e0] ss:$20 sps:$4 sm:$0xff]   ;;  %v3232_v4 = vld [vmem:[#allocation2 + $0x508] ss:$20 sps:$4 sm:$0xff]  }
 0x29e   :  { %1656 = vmatprep.mubr.bf16.mxu1 %v1122_v16  ;;  %v3606_v29 = vsel %vm1110_vm6, %v1114_v59, %v1116_v7  ;;  %v1125_v39 = vpack.c.bf16 %v3603_v28, %v3600_v15  ;;  %v1126_v34 = vpack.c.bf16 %v2851_v53, %v2851_v53  ;;  %v3219_v53 = vld [vmem:[#allocation2 + $0x444] ss:$20 sps:$4 sm:$0xff]   ;;  %v3237_v5 = vld [vmem:[#allocation2 + $0x534] ss:$20 sps:$4 sm:$0xff]   ;;  %v1129_v6 = vpack.c.bf16 %v3582_v17, %v3582_v17  ;;  %v3246_v13 = vld [vmem:[#allocation2 + $0x5ac] ss:$20 sps:$4 sm:$0xff]  }
 0x29f   :  { %1657 = vmatmul.mubr.bf16.vlgmr.msra.gmra.mrb[4].mxu1 %v1121_v12  ;;  %v3223_v59 = vld [vmem:[#allocation2 + $0x490] ss:$20 sps:$4 sm:$0xff]   ;;  %v3238_v9 = vld [vmem:[#allocation2 + $0x558] ss:$20 sps:$4 sm:$0xff]   ;;  %v1128_v10 = vpack.c.bf16 %v3597_v26, %v3597_v26  ;;  %v3241_v12 = vld [vmem:[#allocation2 + $0x580] ss:$20 sps:$4 sm:$0xff]   ;;  %v1130_v19 = vpack.c.bf16 %v3606_v29, %v3606_v29 }
 0x2a0   :  { %1676 = vmatpush1.bf16.msra.mxu1 %v3184_v22  ;;  %1666 = vmatprep.mubr.bf16.mxu1 %v1127_v27  ;;  %v3235_v7 = vld [vmem:[#allocation2 + $0x530] ss:$20 sps:$4 sm:$0xff]   ;;  %v3244_v17 = vld [vmem:[#allocation2 + $0x5a8] ss:$20 sps:$4 sm:$0xff]   ;;  %v3250_v61 = vld [vmem:[#allocation2 + $0x5f8] ss:$20 sps:$4 sm:$0xff]  }
 0x2a1   :  { %1677 = vmatprep.subr.bf16.mxu1 %v3189_v62  ;;  %v3243_v11 = vld [vmem:[#allocation2 + $0x584] ss:$20 sps:$4 sm:$0xff]   ;;  %v3249_v18 = vld [vmem:[#allocation2 + $0x5d4] ss:$20 sps:$4 sm:$0xff]   ;;  %v3252_v20 = vld [vmem:[#allocation2 + $0x5fc] ss:$20 sps:$4 sm:$0xff]  }
 0x2a2   :  { %v3247_v40 = vld [vmem:[#allocation2 + $0x5d0] ss:$20 sps:$4 sm:$0xff]   ;;  %v3253_v22 = vld [vmem:[#allocation2 + $0x620] ss:$20 sps:$4 sm:$0xff]   ;;  %v3363_v14 = vmov 0.0  }
 0x2a3   :  { %v3255_v16 = vld [vmem:[#allocation2 + $0x624] ss:$20 sps:$4 sm:$0xff]   ;;  %v3263_v26 = vld [vmem:[#allocation2 + $0x1a0] ss:$20 sps:$4 sm:$0xff]   ;;  %v3267_v27 = vld [vmem:[#allocation2 + $0x1c8] ss:$20 sps:$4 sm:$0xff]  }
 0x2a4   :  { %1678 = vmatpush1.bf16.msra.mxu1 %v3187_v30  ;;  %v3257_v23 = vld [vmem:[#allocation2 + $0x150] ss:$20 sps:$4 sm:$0xff]   ;;  %v3268_v15 = vld [vmem:[#allocation2 + $0x88] ss:$20 sps:$4 sm:$0xff]   ;;  %v3276_v30 = vld [vmem:[#allocation2 + $0xd8] ss:$20 sps:$4 sm:$0xff]  }
 0x2a5   :  { %1679 = vmatprep.subr.bf16.mxu1 %v3192_v31  ;;  %v3258_v62 = vld [vmem:[#allocation2 + $0x10] ss:$20 sps:$4 sm:$0xff]   ;;  %2772 = vmatprep.subr.bf16.mxu0 %v3257_v23  ;;  %v3279_v31 = vld [vmem:[#allocation2 + $0x240] ss:$20 sps:$4 sm:$0xff]  }
 0x2a6   :  { %2773 = vmatpush3.bf16.msra.mxu0 %v3258_v62  ;;  %v3271_v28 = vld [vmem:[#allocation2 + $0x1f0] ss:$20 sps:$4 sm:$0xff]  }
 0x2a7   :  { %1667 = vmatmul.mubr.bf16.gmra.mrb[8].mxu1 %v1126_v34  ;;  %v3272_v29 = vld [vmem:[#allocation2 + $0xb0] ss:$20 sps:$4 sm:$0xff]   ;;  %v2625_v34 = vld [vmem:[%s3735_s3 + $0x1] ss:$8 sm:$0x3] }
 0x2a8   :  { %1680 = vmatpush1.bf16.msra.mxu1 %v3190_v32  ;;  %1707 = vmatprep.mubr.bf16.mxu1 %v1124_v24  ;;  %v3259_v24 = vld [vmem:[#allocation2 + $0x178] ss:$20 sps:$4 sm:$0xff]   ;;  %v3280_v32 = vld [vmem:[#allocation2 + $0x100] ss:$20 sps:$4 sm:$0xff]   ;;  %v3277_v23 = vld [vmem:[#allocation2 + $0x470] ss:$20 sps:$4 sm:$0xff]  }
 0x2a9   :  { %1681 = vmatprep.subr.bf16.mxu1 %v3195_v41  ;;  %2774 = vmatprep.subr.bf16.mxu0 %v3259_v24  ;;  %v1217_v41 = vrot.slane %v2625_v34, %v279_v37  ;;  %v3278_v62 = vld [vmem:[#allocation2 + $0x330] ss:$20 sps:$4 sm:$0xff]   ;;  %v3281_v24 = vld [vmem:[#allocation2 + $0x498] ss:$20 sps:$4 sm:$0xff]  }
 0x2ac   :  { %1682 = vmatpush1.bf16.msra.mxu1 %v3193_v35  ;;  %v1221_v35 = vrot.slane %v2625_v34, %v283_v57 }
 0x2ad   :  { %1683 = vmatprep.subr.bf16.mxu1 %v3198_v36 }
 0x2b0   :  { %1684 = vmatpush1.bf16.msra.mxu1 %v3196_v52 }
 0x2b1   :  { %1685 = vmatprep.subr.bf16.mxu1 %v3201_v21 }
 0x2b4   :  { %1686 = vmatpush1.bf16.msra.mxu1 %v3199_v38 }
 0x2b5   :  { %1687 = vmatprep.subr.bf16.mxu1 %v3204_v42 }
 0x2b8   :  { %1688 = vmatpush1.bf16.msra.mxu1 %v3202_v43 }
 0x2b9   :  { %1689 = vmatprep.subr.bf16.mxu1 %v3207_v44 }
 0x2bc   :  { %1690 = vmatpush1.bf16.msra.mxu1 %v3205_v45 }
 0x2bd   :  { %1691 = vmatprep.subr.bf16.mxu1 %v3210_v46 }
 0x2c0   :  { %1692 = vmatpush1.bf16.msra.mxu1 %v3208_v48 }
 0x2c1   :  { %1693 = vmatprep.subr.bf16.mxu1 %v3213_v49 }
 0x2c4   :  { %1694 = vmatpush1.bf16.msra.mxu1 %v3211_v50 }
 0x2c5   :  { %1695 = vmatprep.subr.bf16.mxu1 %v3216_v33 }
 0x2c8   :  { %1696 = vmatpush1.bf16.msra.mxu1 %v3214_v51 }
 0x2c9   :  { %1697 = vmatprep.subr.bf16.mxu1 %v3219_v53 }
 0x2cc   :  { %1698 = vmatpush1.bf16.msra.mxu1 %v3217_v54 }
 0x2cd   :  { %1699 = vmatprep.subr.bf16.mxu1 %v3222_v55 }
 0x2d0   :  { %1700 = vmatpush1.bf16.msra.mxu1 %v3220_v56 }
 0x2d1   :  { %1701 = vmatprep.subr.bf16.mxu1 %v3225_v58 }
 0x2d4   :  { %1702 = vmatpush1.bf16.msra.mxu1 %v3223_v59 }
 0x2d5   :  { %1703 = vmatprep.subr.bf16.mxu1 %v3228_v60 }
 0x2d8   :  { %1704 = vmatpush1.bf16.msra.mxu1 %v3226_v0 }
 0x2d9   :  { %1705 = vmatprep.subr.bf16.mxu1 %v3231_v1 }
 0x2dc   :  { %1706 = vmatpush1.bf16.msra.mxu1 %v3229_v2 }
 0x2dd   :  { %1726 = vmatprep.subr.bf16.mxu1 %v3234_v3 }
 0x2df   :  { %1708 = vmatmul.mubr.bf16.vlgmr.msra.gmra.mrb[4].mxu1 %v1123_v25  ;;  %v3260_v25 = vld [vmem:[#allocation2 + $0x38] ss:$20 sps:$4 sm:$0xff]  }
 0x2e0   :  { %1717 = vmatprep.mubr.bf16.mxu1 %v1129_v6  ;;  %1727 = vmatpush1.bf16.msra.mxu1 %v3232_v4 }
 0x2e1   :  { %1728 = vmatprep.subr.bf16.mxu1 %v3237_v5  ;;  %2775 = vmatpush3.bf16.msra.mxu0 %v3260_v25  ;;  %v3282_v25 = vld [vmem:[#allocation2 + $0x358] ss:$20 sps:$4 sm:$0xff]  }
 0x2e2   :  { %2776 = vmatprep.subr.bf16.mxu0 %v3263_v26  ;;  %v3285_v26 = vld [vmem:[#allocation2 + $0x4c0] ss:$20 sps:$4 sm:$0xff]  }
 0x2e4   :  { %1729 = vmatpush1.bf16.msra.mxu1 %v3235_v7  ;;  %v3365_v7 = vmov 65535  }
 0x2e5   :  { %1730 = vmatprep.subr.bf16.mxu1 %v3240_v8  ;;  %v1814_v8 = vsel %vm1813_vm8, 4294967295, %v3365_v7 }
 0x2e7   :  { %1718 = vmatmul.mubr.bf16.gmra.mrb[8].mxu1 %v1128_v10 }
 0x2e8   :  { %1731 = vmatpush1.bf16.msra.mxu1 %v3238_v9  ;;  %1758 = vmatprep.mubr.bf16.mxu1 %v3362_v47 }
 0x2e9   :  { %1732 = vmatprep.subr.bf16.mxu1 %v3243_v11  ;;  %v1815_v11 = vsel %vm1110_vm6, %v1814_v8, 0 }
 0x2ec   :  { %1733 = vmatpush1.bf16.msra.mxu1 %v3241_v12  ;;  %v3261_v12 = vld [vmem:[#allocation2 + $0x3d0] ss:$20 sps:$4 sm:$0xff]  }
 0x2ed   :  { %1734 = vmatprep.subr.bf16.mxu1 %v3246_v13 }
 0x2f0   :  { %1735 = vmatpush1.bf16.msra.mxu1 %v3244_v17  ;;  %v3256_v17 = vld [vmem:[%s3734_s2 + $0x10] sm:$0x1f]  }
 0x2f1   :  { %1736 = vmatprep.subr.bf16.mxu1 %v3249_v18  ;;  %v3262_v18 = vld [vmem:[#allocation2 + $0x290] ss:$20 sps:$4 sm:$0xff]  }
 0x2f4   :  { %1737 = vmatpush1.bf16.msra.mxu1 %v3247_v40  ;;  %v3265_v40 = vld [vmem:[#allocation2 + $0x3f8] ss:$20 sps:$4 sm:$0xff]  }
 0x2f5   :  { %1738 = vmatprep.subr.bf16.mxu1 %v3252_v20  ;;  %v3266_v20 = vld [vmem:[#allocation2 + $0x2b8] ss:$20 sps:$4 sm:$0xff]  }
 0x2f8   :  { %1739 = vmatpush1.bf16.msra.mxu1 %v3250_v61  ;;  %v3269_v61 = vld [vmem:[#allocation2 + $0x420] ss:$20 sps:$4 sm:$0xff]  }
 0x2f9   :  { %1740 = vmatprep.subr.bf16.mxu1 %v3255_v16  ;;  %v3270_v16 = vld [vmem:[#allocation2 + $0x2e0] ss:$20 sps:$4 sm:$0xff]  }
 0x2fc   :  { %1741 = vmatpush1.bf16.msra.mxu1 %v3253_v22  ;;  %v3273_v22 = vld [vmem:[#allocation2 + $0x448] ss:$20 sps:$4 sm:$0xff]  }
 0x2fd   :  { %2853 = vmatprep.subr.bf16.mxu1 %v3363_v14 }
 0x2ff   :  { %1759 = vmatmul.mubr.bf16.vlgmr.msra.gmra.mrb[4].mxu1 %v1125_v39  ;;  %v3275_v39 = vld [vmem:[#allocation2 + $0x218] ss:$20 sps:$4 sm:$0xff]  }
 0x300   :  { %1768 = vmatprep.mubr.bf16.mxu1 %v3362_v47  ;;  %v3264_v47 = vld [vmem:[#allocation2 + $0x60] ss:$20 sps:$4 sm:$0xff]  }
 0x301   :  { %2777 = vmatpush3.bf16.msra.mxu0 %v3264_v47  ;;  %v3286_v47 = vld [vmem:[#allocation2 + $0x380] ss:$20 sps:$4 sm:$0xff]  }
 0x302   :  { %2778 = vmatprep.subr.bf16.mxu0 %v3267_v27  ;;  %v3283_v27 = vld [vmem:[#allocation2 + $0x268] ss:$20 sps:$4 sm:$0xff]  }
 0x305   :  { %2779 = vmatpush3.bf16.msra.mxu0 %v3268_v15  ;;  %v3284_v15 = vld [vmem:[#allocation2 + $0x128] ss:$20 sps:$4 sm:$0xff]  }
 0x306   :  { %2780 = vmatprep.subr.bf16.mxu0 %v3271_v28  ;;  %v3288_v28 = vld [vmem:[#allocation2 + $0x4e8] ss:$20 sps:$4 sm:$0xff]  }
 0x307   :  { %1769 = vmatmul.mubr.bf16.gmra.mrb[8].mxu1 %v1130_v19  ;;  %v3274_v19 = vld [vmem:[#allocation2 + $0x308] ss:$20 sps:$4 sm:$0xff]  }
 0x308   :  { %2857 = vmatprep.mubr.msk.bf16.mxu1 %vm3364_vm7, %v3363_v14 }
 0x309   :  { %2781 = vmatpush3.bf16.msra.mxu0 %v3272_v29  ;;  %v3289_v29 = vld [vmem:[#allocation2 + $0x3a8] ss:$20 sps:$4 sm:$0xff]  }
 0x30a   :  { %2782 = vmatprep.subr.bf16.mxu0 %v3275_v39 }
 0x30d   :  { %2783 = vmatpush3.bf16.msra.mxu0 %v3276_v30 }
 0x30e   :  { %2784 = vmatprep.subr.bf16.mxu0 %v3279_v31 }
 0x311   :  { %2785 = vmatpush3.bf16.msra.mxu0 %v3280_v32 }
 0x312   :  { %2786 = vmatprep.subr.bf16.mxu0 %v3283_v27 }
 0x315   :  { %2787 = vmatpush3.bf16.msra.mxu0 %v3284_v15 }
 0x316   :  { %2861 = vmatprep.subr.bf16.mxu0 %v3363_v14 }
 0x3d2   :  { %v1760_v36 = vpop.f32.mrb[4].mxu1 }
 0x3d3   :  { %v2935_v52 = vadd.f32 %v1760_v36, %v1217_v41  ;;  %v1762_v21 = vpop.f32.mrb[5].mxu1 }
 0x3d4   :  { %v2936_v38 = vadd.f32 %v1762_v21, %v1221_v35  ;;  %v1764_v42 = vpop.f32.mrb[6].mxu1 }
 0x3d5   :  { %v1777_v43 = vmax.f32 %v2935_v52, 0.0  ;;  %v2937_v44 = vadd.f32 %v1764_v42, %v1217_v41  ;;  %v1766_v45 = vpop.f32.mrb[7].mxu1  ;;  %v3287_v52 = vld [vmem:[#allocation2 + $0x510] ss:$20 sps:$4 sm:$0xff]  }
 0x3d6   :  { %v1778_v46 = vmax.f32 %v2936_v38, 0.0  ;;  %v2938_v48 = vadd.f32 %v1766_v45, %v1221_v35  ;;  %v3292_v45 = vld [vmem:[#allocation2 + $0x588] ss:$20 sps:$4 sm:$0xff]  }
 0x3d7   :  { %v1779_v49 = vmax.f32 %v2937_v44, 0.0  ;;  %v3291_v44 = vld [vmem:[#allocation2 + $0x560] ss:$20 sps:$4 sm:$0xff]  }
 0x3d8   :  { %v1783_v50 = vmax.f32 %v1777_v43, %v1778_v46  ;;  %v1780_v33 = vmax.f32 %v2938_v48, 0.0  ;;  %v3290_v43 = vld [vmem:[#allocation2 + $0x538] ss:$20 sps:$4 sm:$0xff]   ;;  %v3293_v46 = vld [vmem:[#allocation2 + $0x5b0] ss:$20 sps:$4 sm:$0xff]  }
 0x3d9   :  { %v3294_v48 = vld [vmem:[#allocation2 + $0x5d8] ss:$20 sps:$4 sm:$0xff]  }
 0x3da   :  { %v1784_v51 = vmax.f32 %v1779_v49, %v1780_v33  ;;  %v1770_v53 = vpop.f32.mrb[8].mxu1  ;;  %v1789_v55 = vrot.slane %v1783_v50, 1  ;;  %v3295_v49 = vld [vmem:[#allocation2 + $0x600] ss:$20 sps:$4 sm:$0xff]  }
 0x3db   :  { %v2939_v54 = vadd.f32 %v1770_v53, %v1217_v41  ;;  %v1772_v37 = vpop.f32.mrb[9].mxu1  ;;  %v3298_v53 = vld [vmem:[%s3734_s2 + $0x20] sm:$0xff]  }
 0x3dc   :  { %v1790_v63 = vrot.slane %v1784_v51, 1  ;;  %v2940_v57 = vadd.f32 %v1772_v37, %v1221_v35  ;;  %v1774_v56 = vpop.f32.mrb[10].mxu1  ;;  %v3300_v37 = vld [vmem:[%s3734_s2 + $0x30] sm:$0xff]  }
 0x3dd   :  { %v1781_v58 = vmax.f32 %v2939_v54, 0.0  ;;  %v1775_v59 = vpop.f32.mrb[11].mxu1  ;;  %v3299_v54 = vld [vmem:[%s3734_s2 + $0x28] sm:$0xff]   ;;  %v3304_v56 = vld [vmem:[%s3734_s2 + $0x50] sm:$0xff]  }
 0x3de   :  { %v1791_v60 = vsel %vm124_vm1, %v1789_v55, %v1790_v63  ;;  %v1782_v0 = vmax.f32 %v2940_v57, 0.0  ;;  %v3301_v55 = vld [vmem:[%s3734_s2 + $0x38] sm:$0xff]   ;;  %v3303_v57 = vld [vmem:[%s3734_s2 + $0x48] sm:$0xff]   ;;  %v3306_v59 = vld [vmem:[%s3734_s2 + $0x60] sm:$0xff]  }
 0x3df   :  { %v1797_v1 = vmax.f32 %v1783_v50, %v1791_v60  ;;  %v3296_v50 = vld [vmem:[#allocation2 + $0x628] ss:$20 sps:$4 sm:$0xff]  }
 0x3e0   :  { %v1785_v2 = vmax.f32 %v1781_v58, %v1782_v0  ;;  %v3305_v58 = vld [vmem:[%s3734_s2 + $0x58] sm:$0xff]   ;;  %v3307_v60 = vld [vmem:[%s3734_s2 + $0x68] sm:$0xff]   ;;  %v3308_v0 = vld [vmem:[%s3734_s2 + $0x70] sm:$0xff]  }
 0x3e2   :  { %v1792_v3 = vrot.slane %v1785_v2, 1 }
 0x3e4   :  { %v1793_v4 = vsel %vm124_vm1, %v1790_v63, %v1792_v3  ;;  %v1799_v5 = vmax.f32 %v1785_v2, %v1792_v3  ;;  %v3302_v63 = vld [vmem:[%s3734_s2 + $0x40] sm:$0xff]  }
 0x3e5   :  { %v1798_v6 = vmax.f32 %v1784_v51, %v1793_v4  ;;  %v3297_v51 = vld [vmem:[%s3734_s2 + $0x18] sm:$0xff]   ;;  %v1952_v3 = vld [vmem:[%s3735_s3 + $0x2] ss:$0 sm:$0xff] }
 0x3e6   :  { %v1801_v9 = vpack.c.bf16 %v1799_v5, %v1799_v5 }
 0x3e7   :  { %v1800_v10 = vpack.c.bf16 %v1798_v6, %v1797_v1 }
 0x3e8   :  { %v1817_v13 = vand.u32 %v1815_v11, %v1801_v9 }
 0x3e9   :  { %2854 = vmatpush3.bf16.msra.mxu1 %v1800_v10 }
 0x3ea   :  { %2855 = vmatprep.subr.bf16.mxu1 %v3363_v14 }
 0x3ed   :  { %2856 = vmatpush3.bf16.msra.mxu1 %v1817_v13 }
 0x3ee   :  { %2794 = vmatprep.subr.bf16.mxu1 %v3261_v12 }
 0x3f0   :  { %2858 = vmatmul.mubr.msk.bf16.vlgmr.msra.gmra.mrb[12].mxu1 %vm1809_vm9, %v3256_v17 }
 0x3f1   :  { %2795 = vmatpush3.bf16.msra.mxu1 %v3262_v18 }
 0x3f2   :  { %2796 = vmatprep.subr.bf16.mxu1 %v3265_v40 }
 0x3f5   :  { %2797 = vmatpush3.bf16.msra.mxu1 %v3266_v20 }
 0x3f6   :  { %2798 = vmatprep.subr.bf16.mxu1 %v3269_v61 }
 0x3f9   :  { %2799 = vmatpush3.bf16.msra.mxu1 %v3270_v16 }
 0x3fa   :  { %2800 = vmatprep.subr.bf16.mxu1 %v3273_v22 }
 0x3fd   :  { %2801 = vmatpush3.bf16.msra.mxu1 %v3274_v19  ;;  %v3309_v19 = vld [vmem:[%s3734_s2 + $0x78] sm:$0xff]  }
 0x3fe   :  { %2802 = vmatprep.subr.bf16.mxu1 %v3277_v23  ;;  %v3310_v23 = vld [vmem:[%s3734_s2 + $0x80] ss:$0 sps:$4 sm:$0x33]   ;;  %s3366_s2 = smov [#allocation5]  }
 0x3ff   :  { %s2523_s10 = sshll.u32 %s3366_s2, 4  ;;  %s2524_s10 = int_to_ptr.vmem [resolvable:$true] %s2523_s10 }
 0x400   :  { %s3333_s11 = scalar_lea.vmem %s2524_s10, 32  ;;  %p3338_p9 = scmp.lt.s32.totalorder %s2524_s10, %s2524_s10 }
 0x401   :  { %2803 = vmatpush3.bf16.msra.mxu1 %v3278_v62  ;;  %v2473_v62 = vsel %vm2471_vm10, %v3310_v23, 0  ;;  %p3334_p8 = scmp.ne.s32.totalorder %s2524_s10, %s3333_s11  ;;  %p3339_p10 = scmp.lt.s32.totalorder %s3333_s11, %s3333_s11 }
 0x402   :  { %2804 = vmatprep.subr.bf16.mxu1 %v3281_v24  ;;  %v2331_v24 = vld [vmem:[%s3735_s3 + $0x3] ss:$0 sm:$0xff] }
 0x403   :  { %p3340_p11 = por %p3339_p10, %p3338_p9 }
 0x405   :  { %2805 = vmatpush3.bf16.msra.mxu1 %v3282_v25  ;;  %p3341_p12 = pnand %p3340_p11, %p3334_p8 }
 0x406   :  { %2806 = vmatprep.subr.bf16.mxu1 %v3285_v26 }
 0x409   :  { %2807 = vmatpush3.bf16.msra.mxu1 %v3286_v47 }
 0x40a   :  { %2808 = vmatprep.subr.bf16.mxu1 %v3288_v28 }
 0x40d   :  { %2809 = vmatpush3.bf16.msra.mxu1 %v3289_v29 }
 0x40e   :  { %2881 = vmatprep.subr.bf16.mxu1 %v3363_v14 }
 0x4c3   :  { %v1853_v39 = vpop.f32.mrb[12].mxu1 }
 0x4c4   :  { %v1863_v30 = vrot.slane %v1853_v39, 4  ;;  %v1861_v31 = vrot.slane %v1853_v39, 2  ;;  %v2859_v32 = vpop.f32.mrb[13].mxu1  ;;  %v1865_v34 = vrot.slane %v1853_v39, 6  ;;  %v1867_v42 = vpack.c.bf16 %v1853_v39, %v1853_v39 }
 0x4c5   :  { %v1856_v41 = vpop.f32.mrb[14].mxu1 }
 0x4c6   :  { %v1869_v35 = vpack.c.bf16 %v1863_v30, %v1863_v30  ;;  %v1868_v36 = vpack.c.bf16 %v1861_v31, %v1861_v31  ;;  %v2860_v21 = vpop.f32.mrb[15].mxu1  ;;  %v1870_v38 = vpack.c.bf16 %v1865_v34, %v1865_v34  ;;  %v1871_v33 = vpack.c.bf16 %v1856_v41, %v1856_v41 }
 0x4c8   :  { %2225 = vmatprep.mubr.bf16.mxu0 %v1868_v36  ;;  %2265 = vmatprep.mubr.bf16.mxu1 %v1870_v38 }
 0x4c9   :  { %2226 = vmatmul.mubr.bf16.vlgmr.msra.gmra.mrb[20].mxu0 %v1867_v42  ;;  %2266 = vmatmul.mubr.bf16.vlgmr.msra.gmra.mrb[16].mxu1 %v1869_v35 }
 0x4ca   :  { %2862 = vmatpush3.bf16.msra.mxu0 %v3287_v52  ;;  %2877 = vmatprep.mubr.msk.bf16.mxu0 %vm3364_vm7, %v3363_v14 }
 0x4cb   :  { %2863 = vmatprep.subr.bf16.mxu0 %v3363_v14  ;;  %2897 = vmatprep.mubr.msk.bf16.mxu1 %vm3364_vm7, %v3363_v14 }
 0x4cc   :  { %2882 = vmatpush3.bf16.msra.mxu1 %v3297_v51 }
 0x4cd   :  { %2883 = vmatprep.subr.bf16.mxu1 %v3363_v14 }
 0x4ce   :  { %2864 = vmatpush3.bf16.msra.mxu0 %v3290_v43 }
 0x4cf   :  { %2865 = vmatprep.subr.bf16.mxu0 %v3363_v14 }
 0x4d0   :  { %2884 = vmatpush3.bf16.msra.mxu1 %v3298_v53 }
 0x4d1   :  { %2885 = vmatprep.subr.bf16.mxu1 %v3363_v14 }
 0x4d2   :  { %2866 = vmatpush3.bf16.msra.mxu0 %v3291_v44 }
 0x4d3   :  { %2867 = vmatprep.subr.bf16.mxu0 %v3363_v14 }
 0x4d4   :  { %2886 = vmatpush3.bf16.msra.mxu1 %v3299_v54 }
 0x4d5   :  { %2887 = vmatprep.subr.bf16.mxu1 %v3363_v14 }
 0x4d6   :  { %2868 = vmatpush3.bf16.msra.mxu0 %v3292_v45 }
 0x4d7   :  { %2869 = vmatprep.subr.bf16.mxu0 %v3363_v14 }
 0x4d8   :  { %2888 = vmatpush3.bf16.msra.mxu1 %v3300_v37 }
 0x4d9   :  { %2889 = vmatprep.subr.bf16.mxu1 %v3363_v14 }
 0x4da   :  { %2870 = vmatpush3.bf16.msra.mxu0 %v3293_v46 }
 0x4db   :  { %2871 = vmatprep.subr.bf16.mxu0 %v3363_v14 }
 0x4dc   :  { %2890 = vmatpush3.bf16.msra.mxu1 %v3301_v55 }
 0x4dd   :  { %2891 = vmatprep.subr.bf16.mxu1 %v3363_v14 }
 0x4de   :  { %2872 = vmatpush3.bf16.msra.mxu0 %v3294_v48 }
 0x4df   :  { %2873 = vmatprep.subr.bf16.mxu0 %v3363_v14 }
 0x4e0   :  { %2892 = vmatpush3.bf16.msra.mxu1 %v3302_v63 }
 0x4e1   :  { %2893 = vmatprep.subr.bf16.mxu1 %v3363_v14 }
 0x4e2   :  { %2874 = vmatpush3.bf16.msra.mxu0 %v3295_v49 }
 0x4e3   :  { %2875 = vmatprep.subr.bf16.mxu0 %v3363_v14 }
 0x4e4   :  { %2894 = vmatpush3.bf16.msra.mxu1 %v3303_v57 }
 0x4e5   :  { %2895 = vmatprep.subr.bf16.mxu1 %v3363_v14 }
 0x4e6   :  { %2876 = vmatpush3.bf16.msra.mxu0 %v3296_v50 }
 0x4e7   :  { %2901 = vmatprep.subr.bf16.mxu0 %v3363_v14 }
 0x4e8   :  { %2896 = vmatpush3.bf16.msra.mxu1 %v3304_v56 }
 0x4e9   :  { %2878 = vmatmul.mubr.bf16.vlgmr.msra.gmra.mrb[24].mxu0 %v1871_v33 }
 0x4ea   :  { %2913 = vmatprep.mubr.msk.bf16.mxu0 %vm3364_vm7, %v3363_v14  ;;  %2902 = vmatpush3.bf16.msra.mxu0 %v3305_v58 }
 0x4eb   :  { %2903 = vmatprep.subr.bf16.mxu0 %v3363_v14 }
 0x4ee   :  { %2904 = vmatpush3.bf16.msra.mxu0 %v3306_v59 }
 0x4ef   :  { %2905 = vmatprep.subr.bf16.mxu0 %v3363_v14 }
 0x4f2   :  { %2906 = vmatpush3.bf16.msra.mxu0 %v3307_v60 }
 0x4f3   :  { %2907 = vmatprep.subr.bf16.mxu0 %v3363_v14 }
 0x4f6   :  { %2908 = vmatpush3.bf16.msra.mxu0 %v3308_v0 }
 0x4f7   :  { %2909 = vmatprep.subr.bf16.mxu0 %v3363_v14 }
 0x4fa   :  { %2910 = vmatpush3.bf16.msra.mxu0 %v3309_v19 }
 0x4fb   :  { %2911 = vmatprep.subr.bf16.mxu0 %v3363_v14  ;;  %v2433_v14 = vld [vmem:[%s3735_s3 + $0x4] ss:$0 sm:$0xff] }
 0x4fe   :  { %2912 = vmatpush3.bf16.msra.mxu0 %v2473_v62 }
 0x59c   :  { %v2788_v1 = vpop.f32.mrb[20].mxu0  ;;  %v2810_v2 = vpop.f32.mrb[16].mxu1 }
 0x59d   :  { %v2789_v4 = vpop.f32.mrb[21].mxu0  ;;  %v2811_v5 = vpop.f32.mrb[17].mxu1 }
 0x59e   :  { %v2790_v6 = vadd.f32 %v2789_v4, %v2788_v1  ;;  %v2791_v7 = vpop.f32.mrb[22].mxu0  ;;  %v2812_v8 = vadd.f32 %v2811_v5, %v2810_v2  ;;  %v2813_v9 = vpop.f32.mrb[18].mxu1 }
 0x59f   :  { %v2792_v10 = vpop.f32.mrb[23].mxu0  ;;  %v2814_v11 = vpop.f32.mrb[19].mxu1 }
 0x5a0   :  { %v2228_v12 = vadd.f32 %v2790_v6, %v1952_v3 }
 0x5a2   :  { %v2268_v13 = vadd.f32 %v2812_v8, %v2228_v12 }
 0x5bc   :  { %v2307_v17 = vpop.f32.mrb[24].mxu0 }
 0x5bd   :  { %v2308_v18 = vadd.f32 %v2307_v17, %v2268_v13  ;;  %v2879_v40 = vpop.f32.mrb[25].mxu0 }
 0x5be   :  { %v2310_v20 = vpop.f32.mrb[26].mxu0 }
 0x5bf   :  { %v2313_v61 = vmax.f32 %v2308_v18, 0.0  ;;  %v2880_v16 = vpop.f32.mrb[27].mxu0 }
 0x5c1   :  { %v2314_v22 = vpack.c.bf16 %v2313_v61, %v2313_v61 }
 0x5c3   :  { %2898 = vmatmul.mubr.bf16.vlgmr.msra.gmra.mrb[20].mxu1 %v2314_v22 }
 0x696   :  { %v2414_v25 = vpop.f32.mrb[20].mxu1 }
 0x697   :  { %v2415_v26 = vadd.f32 %v2414_v25, %v2331_v24  ;;  %v2899_v47 = vpop.f32.mrb[21].mxu1 }
 0x698   :  { %v2417_v27 = vpop.f32.mrb[22].mxu1 }
 0x699   :  { %v2420_v15 = vmax.f32 %v2415_v26, 0.0  ;;  %v2900_v28 = vpop.f32.mrb[23].mxu1 }
 0x69b   :  { %v2421_v29 = vpack.c.bf16 %v2420_v15, %v2420_v15 }
 0x69d   :  { %2914 = vmatmul.mubr.msk.bf16.vlgmr.msra.gmra.mrb[28].mxu0 %vm2467_vm11, %v2421_v29 }
 0x770   :  { %v2509_v39 = vpop.f32.mrb[28].mxu0 }
 0x771   :  { %v2510_v30 = vadd.f32 %v2509_v39, %v2433_v14  ;;  %v2915_v31 = vpop.f32.mrb[29].mxu0 }
 0x772   :  { %v2512_v32 = vpop.f32.mrb[30].mxu0 }
 0x773   :  { %v2916_v34 = vpop.f32.mrb[31].mxu0  ;;  %2516 = vst.msk [vmem:[#allocation5] sm:$0x3] %vm2515_vm12, %v2510_v30 }
 0x774   :  { %3344 = shalt.err (!%p3341_p12)
}
 0x775   :  { %s3345_s3 = scalar_lea.hbm %s3736_s4, 32 }
 0x776   :  { %p3346_p13 = scmp.ne.s32.totalorder %s3736_s4, %s3345_s3  ;;  %p3349_p0 = scmp.lt.u32.totalorder %s3345_s3, %s3736_s4 }
 0x778   :  { %p3351_p1 = pnand %p3349_p0, %p3346_p13 }
 0x77a   :  { %3354 = shalt.err (!%p3351_p1)
}
 0x77b   :  { %2526 = dma.vmem_to_hbm [thread:$0]  %s2524_s10, 32, %s3736_s4, [#allocation4]  }
 0x77c   :  { %3357 = dma.done.wait [#allocation4], 32  }
 0x77d   :  { %3358 = vsyncadd [#allocation4], 4294967264 }
 0x77e   :  { %2530 = vsyncpa [#allocation3], 1 }
 0x77f   :  { %2531 = vsyncpa [#allocation4], 1 }

</bundles_post_ra>
